<compile_context>
chip_gen: v7x
topology: tpu7x:2x2x1
jax: 0.10.0
libtpu: 0.0.40
codegen_flags: <defaults>
</compile_context>

<pallas_src>
import numpy as np
import jax
import jax.numpy as jnp
from jax.experimental import pallas as pl
from jax.experimental.pallas import tpu as pltpu


# ---------------------------------------------------------------------------
# numpy constant builders (weight-independent structure).
# ---------------------------------------------------------------------------
def _bilinear_matrix(s_in, s_out):
    """(s_out, s_in) interpolation matrix, bilinear, align_corners=True."""
    M = np.zeros((s_out, s_in), np.float32)
    if s_out == 1 or s_in == 1:
        M[:, 0] = 1.0
        return M
    i = np.arange(s_out)
    src = i * (s_in - 1) / (s_out - 1)
    lo = np.floor(src).astype(np.int64)
    hi = np.minimum(lo + 1, s_in - 1)
    frac = (src - lo).astype(np.float32)
    M[i, lo] += 1.0 - frac
    M[i, hi] += frac
    return M


def _replicate_pad_matrix(s, p):
    """(s+2p, s) 0/1 matrix with (M @ v) == replicate-pad of v along that axis."""
    M = np.zeros((s + 2 * p, s), np.float32)
    idx = np.clip(np.arange(-p, s + p), 0, s - 1)
    M[np.arange(s + 2 * p), idx] = 1.0
    return M


# ---------------------------------------------------------------------------
# Fused decoder kernel: one grid step == one batch sample, all stages.
# Per-stage constant refs: [G_0..G_{k-1}, CwT_all, bias_col, Eavg].
# Trailing refs: [UwT, UhEven_blockdiag, UhOdd_blockdiag].  Last ref = output.
# ---------------------------------------------------------------------------
def _make_decoder_kernel(stage_meta):
    def kernel(x_ref, *refs):
        o_ref = refs[-1]
        consts = refs[:-1]

        a = x_ref[0]                       # (Cin0*H0, W0) channel-stacked slab
        idx = 0
        for meta in stage_meta:
            k, wc = meta['k'], meta['wc']
            g_refs = consts[idx:idx + k]; idx += k     # (Cout*Hc, Cin*Hin) x k
            cw_ref = consts[idx]; idx += 1             # (Win, k*Wc)
            b_ref = consts[idx]; idx += 1              # (Cout*Hc, 1)
            e_ref = consts[idx]; idx += 1              # (Cout*Hc, Cout*Hc)

            # Conv2d (replicate pad + previous-stage 2x upsample folded into
            # the constant matrices): k+1 channel-stacked MXU matmuls.
            t_all = jnp.dot(a, cw_ref[...], preferred_element_type=jnp.float32)
            acc = jnp.dot(g_refs[0][...], t_all[:, 0:wc],
                          preferred_element_type=jnp.float32)
            for dx in range(1, k):
                acc = acc + jnp.dot(g_refs[dx][...],
                                    t_all[:, dx * wc:(dx + 1) * wc],
                                    preferred_element_type=jnp.float32)

            # bias + ReLU
            y = jnp.maximum(acc + b_ref[...], 0.0)     # (Cout*Hc, Wc)

            # InstanceNorm2d (affine=False, biased variance, eps=1e-5), all
            # channels at once: Eavg sums + broadcasts each channel row-block.
            mean = jnp.sum(
                jnp.dot(e_ref[...], y, preferred_element_type=jnp.float32),
                axis=1, keepdims=True)                 # (Cout*Hc, 1)
            d = y - mean
            var = jnp.sum(
                jnp.dot(e_ref[...], d * d, preferred_element_type=jnp.float32),
                axis=1, keepdims=True)
            a = d * jax.lax.rsqrt(var + 1e-5)          # carried to next stage

        # Final 2x bilinear upsample (align_corners=True) of the last stage,
        # emitted lane-dense: even / odd output rows side by side on lanes.
        uw_ref, uhe_ref, uho_ref = consts[idx], consts[idx + 1], consts[idx + 2]
        wide = jnp.dot(a, uw_ref[...], preferred_element_type=jnp.float32)   # (C*Hc, 2Wc)
        even = jnp.dot(uhe_ref[...], wide, preferred_element_type=jnp.float32)
        odd = jnp.dot(uho_ref[...], wide, preferred_element_type=jnp.float32)
        o_ref[0] = jnp.concatenate([even, odd], axis=-1)   # (C*Hc, 4Wc), unmasked store

    return kernel


# ---------------------------------------------------------------------------
# Wrapper: builds the fused constant matrices and launches one pallas_call.
# ---------------------------------------------------------------------------
def decoder_forward(x_nchw, params):
    """x_nchw: (N, C0, H0, W0) f32.  params: list of (w_hwio, b).
    Returns NCHW output identical to the PyTorch Decoder forward."""
    n = int(x_nchw.shape[0])
    c0, h0, w0 = (int(d) for d in x_nchw.shape[1:])

    def full_spec(shape):
        return pl.BlockSpec(shape, lambda i: (0,) * len(shape))

    stage_meta = []
    consts = []
    in_specs = [pl.BlockSpec((1, c0 * h0, w0), lambda i: (i, 0, 0))]

    cin, hin, win = c0, h0, w0          # carried (pre-upsample) activation dims
    for s, (wgt, b) in enumerate(params):
        k = int(wgt.shape[0])
        cout = int(wgt.shape[3])
        p = (k - 1) // 2                               # getPadSize(kSize, stride=1)
        hc = hin if s == 0 else 2 * hin                # conv-output spatial dims
        wc = win if s == 0 else 2 * win                # (prev upsample folded in)

        # Carried activation -> (upsampled +) replicate-padded conv input maps.
        up_h = np.eye(hin, dtype=np.float32) if s == 0 else _bilinear_matrix(hin, hc)
        up_w = np.eye(win, dtype=np.float32) if s == 0 else _bilinear_matrix(win, wc)
        pad_h = _replicate_pad_matrix(hc, p) @ up_h    # (hc+2p, hin)
        pad_w = _replicate_pad_matrix(wc, p) @ up_w    # (wc+2p, win)

        # Per-tap conv matrices: channel+row mixing (left), column mixing (right).
        g_list = []
        for dx in range(k):
            g = jnp.zeros((cout * hc, cin * hin), jnp.float32)
            for dy in range(k):
                w_oc = jnp.transpose(wgt[dy, dx]).astype(jnp.float32)   # (cout, cin)
                g = g + jnp.kron(w_oc, jnp.asarray(pad_h[dy:dy + hc, :]))
            g_list.append(g)
        cw_all = np.concatenate([pad_w[dx:dx + wc, :].T for dx in range(k)], axis=1)
        b_col = jnp.repeat(b.astype(jnp.float32), hc).reshape(cout * hc, 1)
        e_avg = np.kron(np.eye(cout, dtype=np.float32),
                        np.ones((hc, hc), np.float32)) / np.float32(hc * wc)

        consts += g_list + [jnp.asarray(cw_all), b_col, jnp.asarray(e_avg)]
        in_specs += ([full_spec((cout * hc, cin * hin))] * k
                     + [full_spec((win, k * wc)),
                        full_spec((cout * hc, 1)),
                        full_spec((cout * hc, cout * hc))])
        stage_meta.append(dict(k=k, wc=wc))
        cin, hin, win = cout, hc, wc
        # TODO(synk): Dropout2d path omitted (module instantiated with dropout=None).

    # Trailing 2x upsample of the last stage, split into even/odd output rows
    # so the kernel can emit a lane-dense (cin*hin, 4*win) slab.
    ho, wo = 2 * hin, 2 * win
    uw_t = _bilinear_matrix(win, wo).T                             # (win, wo)
    mh = _bilinear_matrix(hin, ho)                                 # (ho, hin)
    uh_even = np.kron(np.eye(cin, dtype=np.float32), mh[0::2, :])  # (cin*hin, cin*hin)
    uh_odd = np.kron(np.eye(cin, dtype=np.float32), mh[1::2, :])
    consts += [jnp.asarray(uw_t), jnp.asarray(uh_even), jnp.asarray(uh_odd)]
    in_specs += [full_spec((win, wo)),
                 full_spec((cin * hin, cin * hin)),
                 full_spec((cin * hin, cin * hin))]

    out_flat = pl.pallas_call(
        _make_decoder_kernel(stage_meta),
        out_shape=jax.ShapeDtypeStruct((n, cin * hin, 2 * wo), jnp.float32),
        grid=(n,),
        in_specs=in_specs,
        out_specs=pl.BlockSpec((1, cin * hin, 2 * wo), lambda i: (i, 0, 0)),
        compiler_params=pltpu.CompilerParams(
            dimension_semantics=("parallel",)),   # v7x: one sample per TensorCore
    )(x_nchw.reshape(n, c0 * h0, w0), *consts)

    # (n, C*Ho/2, 4*Wc) -> (n, C, Ho, Wo): contiguous, free metadata reshape.
    return out_flat.reshape(n, cin, ho, wo)


# ---------------------------------------------------------------------------
# Pure-JAX reference (plain XLA ops) for a correctness check.
# ---------------------------------------------------------------------------
def decoder_reference(x_nchw, params):
    x = x_nchw
    for (w, b) in params:
        k = w.shape[0]
        p = (k - 1) // 2
        xh = jnp.transpose(x, (0, 2, 3, 1))
        xp = jnp.pad(xh, ((0, 0), (p, p), (p, p), (0, 0)), mode='edge')
        y = jax.lax.conv_general_dilated(
            xp, w, (1, 1), 'VALID',
            dimension_numbers=('NHWC', 'HWIO', 'NHWC')) + b.reshape(1, 1, 1, -1)
        y = jnp.maximum(y, 0.0)
        mean = y.mean(axis=(1, 2), keepdims=True)
        var = ((y - mean) ** 2).mean(axis=(1, 2), keepdims=True)
        y = (y - mean) / jnp.sqrt(var + 1e-5)
        H, W = y.shape[1], y.shape[2]
        mh = jnp.asarray(_bilinear_matrix(H, 2 * H))
        mw = jnp.asarray(_bilinear_matrix(W, 2 * W))
        y = jnp.einsum('oh,nhwc->nowc', mh, y)
        y = jnp.einsum('pw,nowc->nopc', mw, y)
        x = jnp.transpose(y, (0, 3, 1, 2))
    return x


if __name__ == "__main__":
    # Decoder config: channelNum=[4, 8], kernelSize=[3, 3], outputChannel=3.
    channel_num = [4, 8]
    kernel_size = [3, 3]
    output_channel = 3

    key = jax.random.PRNGKey(0)
    params = []
    for i, (cin_i, k) in enumerate(zip(channel_num, kernel_size)):
        cout_i = output_channel if i == len(channel_num) - 1 else channel_num[i + 1]
        key, kw, kb = jax.random.split(key, 3)
        wgt = jax.random.normal(kw, (k, k, cin_i, cout_i), jnp.float32) * 0.1
        b = jax.random.normal(kb, (cout_i,), jnp.float32) * 0.01
        params.append((wgt, b))

    key, kx = jax.random.split(key)
    x = jax.random.normal(kx, (2, 4, 16, 16), jnp.float32)   # NCHW input

    fwd = jax.jit(decoder_forward)
    out = jax.block_until_ready(fwd(x, params))

    ref = jax.block_until_ready(decoder_reference(x, params))
    assert out.shape == (2, 3, 64, 64), out.shape
    np.testing.assert_allclose(np.asarray(out), np.asarray(ref),
                               atol=2e-3, rtol=2e-3)
    print("KERNEL_OK")
</pallas_src>

<mosaic_0001>
module attributes {stable_mosaic.version = 11 : i64} {
  func.func @kernel(%arg0: i32, %arg1: memref<1x64x16xf32, #tpu.memory_space<vmem>>, %arg2: memref<128x64xf32, #tpu.memory_space<vmem>>, %arg3: memref<128x64xf32, #tpu.memory_space<vmem>>, %arg4: memref<128x64xf32, #tpu.memory_space<vmem>>, %arg5: memref<16x48xf32, #tpu.memory_space<vmem>>, %arg6: memref<128x1xf32, #tpu.memory_space<vmem>>, %arg7: memref<128x128xf32, #tpu.memory_space<vmem>>, %arg8: memref<96x128xf32, #tpu.memory_space<vmem>>, %arg9: memref<96x128xf32, #tpu.memory_space<vmem>>, %arg10: memref<96x128xf32, #tpu.memory_space<vmem>>, %arg11: memref<16x96xf32, #tpu.memory_space<vmem>>, %arg12: memref<96x1xf32, #tpu.memory_space<vmem>>, %arg13: memref<96x96xf32, #tpu.memory_space<vmem>>, %arg14: memref<32x64xf32, #tpu.memory_space<vmem>>, %arg15: memref<96x96xf32, #tpu.memory_space<vmem>>, %arg16: memref<96x96xf32, #tpu.memory_space<vmem>>, %arg17: memref<1x96x128xf32, #tpu.memory_space<vmem>>) attributes {dimension_semantics = [#tpu.dimension_semantics<parallel>], iteration_bounds = array<i64: 2>, scalar_prefetch = 0 : i64, scratch_operands = 0 : i64, tpu.core_type = #tpu.core_type<tc>, window_params = [{transform_indices = @transform_0, window_bounds = array<i64: 1, 64, 16>}, {pipeline_mode = #tpu.pipeline_mode<synchronous>, transform_indices = @transform_1, window_bounds = array<i64: 128, 64>}, {pipeline_mode = #tpu.pipeline_mode<synchronous>, transform_indices = @transform_2, window_bounds = array<i64: 128, 64>}, {pipeline_mode = #tpu.pipeline_mode<synchronous>, transform_indices = @transform_3, window_bounds = array<i64: 128, 64>}, {pipeline_mode = #tpu.pipeline_mode<synchronous>, transform_indices = @transform_4, window_bounds = array<i64: 16, 48>}, {pipeline_mode = #tpu.pipeline_mode<synchronous>, transform_indices = @transform_5, window_bounds = array<i64: 128, 1>}, {pipeline_mode = #tpu.pipeline_mode<synchronous>, transform_indices = @transform_6, window_bounds = array<i64: 128, 128>}, {pipeline_mode = #tpu.pipeline_mode<synchronous>, transform_indices = @transform_7, window_bounds = array<i64: 96, 128>}, {pipeline_mode = #tpu.pipeline_mode<synchronous>, transform_indices = @transform_8, window_bounds = array<i64: 96, 128>}, {pipeline_mode = #tpu.pipeline_mode<synchronous>, transform_indices = @transform_9, window_bounds = array<i64: 96, 128>}, {pipeline_mode = #tpu.pipeline_mode<synchronous>, transform_indices = @transform_10, window_bounds = array<i64: 16, 96>}, {pipeline_mode = #tpu.pipeline_mode<synchronous>, transform_indices = @transform_11, window_bounds = array<i64: 96, 1>}, {pipeline_mode = #tpu.pipeline_mode<synchronous>, transform_indices = @transform_12, window_bounds = array<i64: 96, 96>}, {pipeline_mode = #tpu.pipeline_mode<synchronous>, transform_indices = @transform_13, window_bounds = array<i64: 32, 64>}, {pipeline_mode = #tpu.pipeline_mode<synchronous>, transform_indices = @transform_14, window_bounds = array<i64: 96, 96>}, {pipeline_mode = #tpu.pipeline_mode<synchronous>, transform_indices = @transform_15, window_bounds = array<i64: 96, 96>}, {transform_indices = @transform_16, window_bounds = array<i64: 1, 96, 128>}]} {
    %c0 = arith.constant 0 : index
    %c0_0 = arith.constant 0 : index
    %c0_1 = arith.constant 0 : index
    %0 = vector.load %arg1[%c0, %c0_0, %c0_1] : memref<1x64x16xf32, #tpu.memory_space<vmem>>, vector<1x64x16xf32>
    %1 = vector.shape_cast %0 : vector<1x64x16xf32> to vector<64x16xf32>
    %c0_2 = arith.constant 0 : index
    %c0_3 = arith.constant 0 : index
    %2 = vector.load %arg5[%c0_2, %c0_3] : memref<16x48xf32, #tpu.memory_space<vmem>>, vector<16x48xf32>
    %cst = arith.constant dense<0.000000e+00> : vector<64x48xf32>
    %3 = tpu.matmul %1, %2, %cst {dimension_numbers = #tpu.dot_dimension_numbers<[1], [0], [0], [1], [0, 0, 1, 1], [], []>} : vector<64x16xf32>, vector<16x48xf32>, vector<64x48xf32> -> vector<64x48xf32>
    %c0_4 = arith.constant 0 : index
    %c0_5 = arith.constant 0 : index
    %4 = vector.load %arg2[%c0_4, %c0_5] : memref<128x64xf32, #tpu.memory_space<vmem>>, vector<128x64xf32>
    %5 = vector.extract_strided_slice %3 {offsets = [0, 0], sizes = [64, 16], strides = [1, 1]} : vector<64x48xf32> to vector<64x16xf32>
    %cst_6 = arith.constant dense<0.000000e+00> : vector<128x16xf32>
    %6 = tpu.matmul %4, %5, %cst_6 {dimension_numbers = #tpu.dot_dimension_numbers<[1], [0], [0], [1], [0, 0, 1, 1], [], []>} : vector<128x64xf32>, vector<64x16xf32>, vector<128x16xf32> -> vector<128x16xf32>
    %c0_7 = arith.constant 0 : index
    %c0_8 = arith.constant 0 : index
    %7 = vector.load %arg3[%c0_7, %c0_8] : memref<128x64xf32, #tpu.memory_space<vmem>>, vector<128x64xf32>
    %8 = vector.extract_strided_slice %3 {offsets = [0, 16], sizes = [64, 16], strides = [1, 1]} : vector<64x48xf32> to vector<64x16xf32>
    %cst_9 = arith.constant dense<0.000000e+00> : vector<128x16xf32>
    %9 = tpu.matmul %7, %8, %cst_9 {dimension_numbers = #tpu.dot_dimension_numbers<[1], [0], [0], [1], [0, 0, 1, 1], [], []>} : vector<128x64xf32>, vector<64x16xf32>, vector<128x16xf32> -> vector<128x16xf32>
    %10 = arith.addf %6, %9 : vector<128x16xf32>
    %c0_10 = arith.constant 0 : index
    %c0_11 = arith.constant 0 : index
    %11 = vector.load %arg4[%c0_10, %c0_11] : memref<128x64xf32, #tpu.memory_space<vmem>>, vector<128x64xf32>
    %12 = vector.extract_strided_slice %3 {offsets = [0, 32], sizes = [64, 16], strides = [1, 1]} : vector<64x48xf32> to vector<64x16xf32>
    %cst_12 = arith.constant dense<0.000000e+00> : vector<128x16xf32>
    %13 = tpu.matmul %11, %12, %cst_12 {dimension_numbers = #tpu.dot_dimension_numbers<[1], [0], [0], [1], [0, 0, 1, 1], [], []>} : vector<128x64xf32>, vector<64x16xf32>, vector<128x16xf32> -> vector<128x16xf32>
    %14 = arith.addf %10, %13 : vector<128x16xf32>
    %c0_13 = arith.constant 0 : index
    %c0_14 = arith.constant 0 : index
    %15 = vector.load %arg6[%c0_13, %c0_14] : memref<128x1xf32, #tpu.memory_space<vmem>>, vector<128x1xf32>
    %16 = vector.broadcast %15 : vector<128x1xf32> to vector<128x16xf32>
    %17 = arith.addf %14, %16 : vector<128x16xf32>
    %cst_15 = arith.constant 0.000000e+00 : f32
    %18 = vector.broadcast %cst_15 : f32 to vector<128x16xf32>
    %19 = arith.maximumf %17, %18 : vector<128x16xf32>
    %c0_16 = arith.constant 0 : index
    %c0_17 = arith.constant 0 : index
    %20 = vector.load %arg7[%c0_16, %c0_17] : memref<128x128xf32, #tpu.memory_space<vmem>>, vector<128x128xf32>
    %cst_18 = arith.constant dense<0.000000e+00> : vector<128x16xf32>
    %21 = tpu.matmul %20, %19, %cst_18 {dimension_numbers = #tpu.dot_dimension_numbers<[1], [0], [0], [1], [0, 0, 1, 1], [], []>} : vector<128x128xf32>, vector<128x16xf32>, vector<128x16xf32> -> vector<128x16xf32>
    %cst_19 = arith.constant dense<0.000000e+00> : vector<128xf32>
    %22 = vector.multi_reduction <add>, %21, %cst_19 [1] : vector<128x16xf32> to vector<128xf32>
    %23 = vector.shape_cast %22 : vector<128xf32> to vector<128x1xf32>
    %24 = vector.broadcast %23 : vector<128x1xf32> to vector<128x16xf32>
    %25 = arith.subf %19, %24 : vector<128x16xf32>
    %c0_20 = arith.constant 0 : index
    %c0_21 = arith.constant 0 : index
    %26 = vector.load %arg7[%c0_20, %c0_21] : memref<128x128xf32, #tpu.memory_space<vmem>>, vector<128x128xf32>
    %27 = arith.mulf %25, %25 : vector<128x16xf32>
    %cst_22 = arith.constant dense<0.000000e+00> : vector<128x16xf32>
    %28 = tpu.matmul %26, %27, %cst_22 {dimension_numbers = #tpu.dot_dimension_numbers<[1], [0], [0], [1], [0, 0, 1, 1], [], []>} : vector<128x128xf32>, vector<128x16xf32>, vector<128x16xf32> -> vector<128x16xf32>
    %cst_23 = arith.constant dense<0.000000e+00> : vector<128xf32>
    %29 = vector.multi_reduction <add>, %28, %cst_23 [1] : vector<128x16xf32> to vector<128xf32>
    %30 = vector.shape_cast %29 : vector<128xf32> to vector<128x1xf32>
    %cst_24 = arith.constant 9.99999974E-6 : f32
    %31 = vector.broadcast %cst_24 : f32 to vector<128x1xf32>
    %32 = arith.addf %30, %31 : vector<128x1xf32>
    %33 = math.rsqrt %32 : vector<128x1xf32>
    %34 = vector.broadcast %33 : vector<128x1xf32> to vector<128x16xf32>
    %35 = arith.mulf %25, %34 : vector<128x16xf32>
    %c0_25 = arith.constant 0 : index
    %c0_26 = arith.constant 0 : index
    %36 = vector.load %arg11[%c0_25, %c0_26] : memref<16x96xf32, #tpu.memory_space<vmem>>, vector<16x96xf32>
    %cst_27 = arith.constant dense<0.000000e+00> : vector<128x96xf32>
    %37 = tpu.matmul %35, %36, %cst_27 {dimension_numbers = #tpu.dot_dimension_numbers<[1], [0], [0], [1], [0, 0, 1, 1], [], []>} : vector<128x16xf32>, vector<16x96xf32>, vector<128x96xf32> -> vector<128x96xf32>
    %c0_28 = arith.constant 0 : index
    %c0_29 = arith.constant 0 : index
    %38 = vector.load %arg8[%c0_28, %c0_29] : memref<96x128xf32, #tpu.memory_space<vmem>>, vector<96x128xf32>
    %39 = vector.extract_strided_slice %37 {offsets = [0, 0], sizes = [128, 32], strides = [1, 1]} : vector<128x96xf32> to vector<128x32xf32>
    %cst_30 = arith.constant dense<0.000000e+00> : vector<96x32xf32>
    %40 = tpu.matmul %38, %39, %cst_30 {dimension_numbers = #tpu.dot_dimension_numbers<[1], [0], [0], [1], [0, 0, 1, 1], [], []>} : vector<96x128xf32>, vector<128x32xf32>, vector<96x32xf32> -> vector<96x32xf32>
    %c0_31 = arith.constant 0 : index
    %c0_32 = arith.constant 0 : index
    %41 = vector.load %arg9[%c0_31, %c0_32] : memref<96x128xf32, #tpu.memory_space<vmem>>, vector<96x128xf32>
    %42 = vector.extract_strided_slice %37 {offsets = [0, 32], sizes = [128, 32], strides = [1, 1]} : vector<128x96xf32> to vector<128x32xf32>
    %cst_33 = arith.constant dense<0.000000e+00> : vector<96x32xf32>
    %43 = tpu.matmul %41, %42, %cst_33 {dimension_numbers = #tpu.dot_dimension_numbers<[1], [0], [0], [1], [0, 0, 1, 1], [], []>} : vector<96x128xf32>, vector<128x32xf32>, vector<96x32xf32> -> vector<96x32xf32>
    %44 = arith.addf %40, %43 : vector<96x32xf32>
    %c0_34 = arith.constant 0 : index
    %c0_35 = arith.constant 0 : index
    %45 = vector.load %arg10[%c0_34, %c0_35] : memref<96x128xf32, #tpu.memory_space<vmem>>, vector<96x128xf32>
    %46 = vector.extract_strided_slice %37 {offsets = [0, 64], sizes = [128, 32], strides = [1, 1]} : vector<128x96xf32> to vector<128x32xf32>
    %cst_36 = arith.constant dense<0.000000e+00> : vector<96x32xf32>
    %47 = tpu.matmul %45, %46, %cst_36 {dimension_numbers = #tpu.dot_dimension_numbers<[1], [0], [0], [1], [0, 0, 1, 1], [], []>} : vector<96x128xf32>, vector<128x32xf32>, vector<96x32xf32> -> vector<96x32xf32>
    %48 = arith.addf %44, %47 : vector<96x32xf32>
    %c0_37 = arith.constant 0 : index
    %c0_38 = arith.constant 0 : index
    %49 = vector.load %arg12[%c0_37, %c0_38] : memref<96x1xf32, #tpu.memory_space<vmem>>, vector<96x1xf32>
    %50 = vector.broadcast %49 : vector<96x1xf32> to vector<96x32xf32>
    %51 = arith.addf %48, %50 : vector<96x32xf32>
    %cst_39 = arith.constant 0.000000e+00 : f32
    %52 = vector.broadcast %cst_39 : f32 to vector<96x32xf32>
    %53 = arith.maximumf %51, %52 : vector<96x32xf32>
    %c0_40 = arith.constant 0 : index
    %c0_41 = arith.constant 0 : index
    %54 = vector.load %arg13[%c0_40, %c0_41] : memref<96x96xf32, #tpu.memory_space<vmem>>, vector<96x96xf32>
    %cst_42 = arith.constant dense<0.000000e+00> : vector<96x32xf32>
    %55 = tpu.matmul %54, %53, %cst_42 {dimension_numbers = #tpu.dot_dimension_numbers<[1], [0], [0], [1], [0, 0, 1, 1], [], []>} : vector<96x96xf32>, vector<96x32xf32>, vector<96x32xf32> -> vector<96x32xf32>
    %cst_43 = arith.constant dense<0.000000e+00> : vector<96xf32>
    %56 = vector.multi_reduction <add>, %55, %cst_43 [1] : vector<96x32xf32> to vector<96xf32>
    %57 = vector.shape_cast %56 : vector<96xf32> to vector<96x1xf32>
    %58 = vector.broadcast %57 : vector<96x1xf32> to vector<96x32xf32>
    %59 = arith.subf %53, %58 : vector<96x32xf32>
    %c0_44 = arith.constant 0 : index
    %c0_45 = arith.constant 0 : index
    %60 = vector.load %arg13[%c0_44, %c0_45] : memref<96x96xf32, #tpu.memory_space<vmem>>, vector<96x96xf32>
    %61 = arith.mulf %59, %59 : vector<96x32xf32>
    %cst_46 = arith.constant dense<0.000000e+00> : vector<96x32xf32>
    %62 = tpu.matmul %60, %61, %cst_46 {dimension_numbers = #tpu.dot_dimension_numbers<[1], [0], [0], [1], [0, 0, 1, 1], [], []>} : vector<96x96xf32>, vector<96x32xf32>, vector<96x32xf32> -> vector<96x32xf32>
    %cst_47 = arith.constant dense<0.000000e+00> : vector<96xf32>
    %63 = vector.multi_reduction <add>, %62, %cst_47 [1] : vector<96x32xf32> to vector<96xf32>
    %64 = vector.shape_cast %63 : vector<96xf32> to vector<96x1xf32>
    %cst_48 = arith.constant 9.99999974E-6 : f32
    %65 = vector.broadcast %cst_48 : f32 to vector<96x1xf32>
    %66 = arith.addf %64, %65 : vector<96x1xf32>
    %67 = math.rsqrt %66 : vector<96x1xf32>
    %68 = vector.broadcast %67 : vector<96x1xf32> to vector<96x32xf32>
    %69 = arith.mulf %59, %68 : vector<96x32xf32>
    %c0_49 = arith.constant 0 : index
    %c0_50 = arith.constant 0 : index
    %70 = vector.load %arg14[%c0_49, %c0_50] : memref<32x64xf32, #tpu.memory_space<vmem>>, vector<32x64xf32>
    %cst_51 = arith.constant dense<0.000000e+00> : vector<96x64xf32>
    %71 = tpu.matmul %69, %70, %cst_51 {dimension_numbers = #tpu.dot_dimension_numbers<[1], [0], [0], [1], [0, 0, 1, 1], [], []>} : vector<96x32xf32>, vector<32x64xf32>, vector<96x64xf32> -> vector<96x64xf32>
    %c0_52 = arith.constant 0 : index
    %c0_53 = arith.constant 0 : index
    %72 = vector.load %arg15[%c0_52, %c0_53] : memref<96x96xf32, #tpu.memory_space<vmem>>, vector<96x96xf32>
    %cst_54 = arith.constant dense<0.000000e+00> : vector<96x64xf32>
    %73 = tpu.matmul %72, %71, %cst_54 {dimension_numbers = #tpu.dot_dimension_numbers<[1], [0], [0], [1], [0, 0, 1, 1], [], []>} : vector<96x96xf32>, vector<96x64xf32>, vector<96x64xf32> -> vector<96x64xf32>
    %c0_55 = arith.constant 0 : index
    %c0_56 = arith.constant 0 : index
    %74 = vector.load %arg16[%c0_55, %c0_56] : memref<96x96xf32, #tpu.memory_space<vmem>>, vector<96x96xf32>
    %cst_57 = arith.constant dense<0.000000e+00> : vector<96x64xf32>
    %75 = tpu.matmul %74, %71, %cst_57 {dimension_numbers = #tpu.dot_dimension_numbers<[1], [0], [0], [1], [0, 0, 1, 1], [], []>} : vector<96x96xf32>, vector<96x64xf32>, vector<96x64xf32> -> vector<96x64xf32>
    %76 = tpu.concatenate %73, %75 in 1 : vector<96x64xf32>, vector<96x64xf32> -> vector<96x128xf32>
    %c0_58 = arith.constant 0 : index
    %c0_59 = arith.constant 0 : index
    %c0_60 = arith.constant 0 : index
    %77 = vector.load %arg17[%c0_58, %c0_59, %c0_60] : memref<1x96x128xf32, #tpu.memory_space<vmem>>, vector<1x96x128xf32>
    %78 = vector.shape_cast %77 : vector<1x96x128xf32> to vector<96x128xf32>
    %79 = vector.shape_cast %76 : vector<96x128xf32> to vector<1x96x128xf32>
    tpu.vector_store %arg17[%c0_58, %c0_59, %c0_60], %79 {strides = array<i32>} : memref<1x96x128xf32, #tpu.memory_space<vmem>>, vector<1x96x128xf32>,
    return
  }
  func.func @transform_0(%arg0: i32) -> (i32, i32, i32) {
    %c0_i32 = arith.constant 0 : i32
    %c0_i32_0 = arith.constant 0 : i32
    %c0_i32_1 = arith.constant 0 : i32
    return %arg0, %c0_i32, %c0_i32_0 : i32, i32, i32
  }
  func.func @transform_1(%arg0: i32) -> (i32, i32) {
    %c0_i32 = arith.constant 0 : i32
    %c0_i32_0 = arith.constant 0 : i32
    %c0_i32_1 = arith.constant 0 : i32
    return %c0_i32, %c0_i32_0 : i32, i32
  }
  func.func @transform_2(%arg0: i32) -> (i32, i32) {
    %c0_i32 = arith.constant 0 : i32
    %c0_i32_0 = arith.constant 0 : i32
    %c0_i32_1 = arith.constant 0 : i32
    return %c0_i32, %c0_i32_0 : i32, i32
  }
  func.func @transform_3(%arg0: i32) -> (i32, i32) {
    %c0_i32 = arith.constant 0 : i32
    %c0_i32_0 = arith.constant 0 : i32
    %c0_i32_1 = arith.constant 0 : i32
    return %c0_i32, %c0_i32_0 : i32, i32
  }
  func.func @transform_4(%arg0: i32) -> (i32, i32) {
    %c0_i32 = arith.constant 0 : i32
    %c0_i32_0 = arith.constant 0 : i32
    %c0_i32_1 = arith.constant 0 : i32
    return %c0_i32, %c0_i32_0 : i32, i32
  }
  func.func @transform_5(%arg0: i32) -> (i32, i32) {
    %c0_i32 = arith.constant 0 : i32
    %c0_i32_0 = arith.constant 0 : i32
    %c0_i32_1 = arith.constant 0 : i32
    return %c0_i32, %c0_i32_0 : i32, i32
  }
  func.func @transform_6(%arg0: i32) -> (i32, i32) {
    %c0_i32 = arith.constant 0 : i32
    %c0_i32_0 = arith.constant 0 : i32
    %c0_i32_1 = arith.constant 0 : i32
    return %c0_i32, %c0_i32_0 : i32, i32
  }
  func.func @transform_7(%arg0: i32) -> (i32, i32) {
    %c0_i32 = arith.constant 0 : i32
    %c0_i32_0 = arith.constant 0 : i32
    %c0_i32_1 = arith.constant 0 : i32
    return %c0_i32, %c0_i32_0 : i32, i32
  }
  func.func @transform_8(%arg0: i32) -> (i32, i32) {
    %c0_i32 = arith.constant 0 : i32
    %c0_i32_0 = arith.constant 0 : i32
    %c0_i32_1 = arith.constant 0 : i32
    return %c0_i32, %c0_i32_0 : i32, i32
  }
  func.func @transform_9(%arg0: i32) -> (i32, i32) {
    %c0_i32 = arith.constant 0 : i32
    %c0_i32_0 = arith.constant 0 : i32
    %c0_i32_1 = arith.constant 0 : i32
    return %c0_i32, %c0_i32_0 : i32, i32
  }
  func.func @transform_10(%arg0: i32) -> (i32, i32) {
    %c0_i32 = arith.constant 0 : i32
    %c0_i32_0 = arith.constant 0 : i32
    %c0_i32_1 = arith.constant 0 : i32
    return %c0_i32, %c0_i32_0 : i32, i32
  }
  func.func @transform_11(%arg0: i32) -> (i32, i32) {
    %c0_i32 = arith.constant 0 : i32
    %c0_i32_0 = arith.constant 0 : i32
    %c0_i32_1 = arith.constant 0 : i32
    return %c0_i32, %c0_i32_0 : i32, i32
  }
  func.func @transform_12(%arg0: i32) -> (i32, i32) {
    %c0_i32 = arith.constant 0 : i32
    %c0_i32_0 = arith.constant 0 : i32
    %c0_i32_1 = arith.constant 0 : i32
    return %c0_i32, %c0_i32_0 : i32, i32
  }
  func.func @transform_13(%arg0: i32) -> (i32, i32) {
    %c0_i32 = arith.constant 0 : i32
    %c0_i32_0 = arith.constant 0 : i32
    %c0_i32_1 = arith.constant 0 : i32
    return %c0_i32, %c0_i32_0 : i32, i32
  }
  func.func @transform_14(%arg0: i32) -> (i32, i32) {
    %c0_i32 = arith.constant 0 : i32
    %c0_i32_0 = arith.constant 0 : i32
    %c0_i32_1 = arith.constant 0 : i32
    return %c0_i32, %c0_i32_0 : i32, i32
  }
  func.func @transform_15(%arg0: i32) -> (i32, i32) {
    %c0_i32 = arith.constant 0 : i32
    %c0_i32_0 = arith.constant 0 : i32
    %c0_i32_1 = arith.constant 0 : i32
    return %c0_i32, %c0_i32_0 : i32, i32
  }
  func.func @transform_16(%arg0: i32) -> (i32, i32, i32) {
    %c0_i32 = arith.constant 0 : i32
    %c0_i32_0 = arith.constant 0 : i32
    %c0_i32_1 = arith.constant 0 : i32
    return %arg0, %c0_i32, %c0_i32_0 : i32, i32, i32
  }
}

</mosaic_0001>

<bundles_post_ra>
// kernel: decoder_forward.1
= control target key start
LH: loop header
LB: loop body
LE: loop exit
PB: predicated region body
PF: predicated region fallthrough
CT: control target
= control target key end

     0   :  { %s5655_s21 = smov 0   ;;  %s6934_s0 = inlined_call_operand.vmem [shape: f32[2,64,16], index: 0, kind: input, shape index: {}]   ;;  %s6935_s1 = inlined_call_operand.vmem [shape: f32[128,64], index: 1, kind: input, shape index: {}]   ;;  %s6936_s2 = inlined_call_operand.vmem [shape: f32[128,64], index: 2, kind: input, shape index: {}]   ;;  %s6937_s3 = inlined_call_operand.vmem [shape: f32[128,64], index: 3, kind: input, shape index: {}]   ;;  %s6938_s4 = inlined_call_operand.vmem [shape: f32[16,48], index: 4, kind: input, shape index: {}]   ;;  %s6939_s5 = inlined_call_operand.vmem [shape: f32[128,1], index: 5, kind: input, shape index: {}]   ;;  %s6940_s6 = inlined_call_operand.vmem [shape: f32[128,128], index: 6, kind: input, shape index: {}]   ;;  %s6941_s7 = inlined_call_operand.vmem [shape: f32[96,128], index: 7, kind: input, shape index: {}]   ;;  %s6942_s8 = inlined_call_operand.vmem [shape: f32[96,128], index: 8, kind: input, shape index: {}]   ;;  %s6943_s9 = inlined_call_operand.vmem [shape: f32[96,128], index: 9, kind: input, shape index: {}]   ;;  %s6944_s10 = inlined_call_operand.vmem [shape: f32[16,96], index: 10, kind: input, shape index: {}]   ;;  %s6945_s11 = inlined_call_operand.vmem [shape: f32[96,1], index: 11, kind: input, shape index: {}]   ;;  %s6946_s12 = inlined_call_operand.vmem [shape: f32[96,96], index: 12, kind: input, shape index: {}]   ;;  %s6947_s13 = inlined_call_operand.vmem [shape: f32[32,64], index: 13, kind: input, shape index: {}]   ;;  %s6948_s14 = inlined_call_operand.vmem [shape: f32[96,96], index: 14, kind: input, shape index: {}]   ;;  %s6949_s15 = inlined_call_operand.vmem [shape: f32[96,96], index: 15, kind: input, shape index: {}]   ;;  %s6950_s16 = inlined_call_operand.vmem [shape: f32[2,96,128], index: 16, kind: output, shape index: {}]  }
   0x1   :  { %6951 = sst [smem:[#allocation2_spill]] %s6934_s0 }
   0x2 LB: > { %s3868_s22 = sadd.s32 4294967295, %s5564_s21   ;;  %p3872_p0 = scmp.ge.s32.totalorder %s5564_s21, 1  ;;  %s5564_s21 = sphi %s5655_s21, %s26_s21  }
   0x3   : > { %p462_p1 = scmp.lt.s32.totalorder %s5564_s21, 3 }
   0x5   : > { %p463_p2 = pnand %p3872_p0, %p462_p1 }
   0x6   : > { %v530_v0 = vld [vmem:[%s6938_s4] sm:$0xff] (!%p463_p2)  ;;  %v531_v1 = vld [vmem:[%s6938_s4 + $0x8] sm:$0xff] (!%p463_p2)  ;;  %p512_p3 = scmp.lt.s32.totalorder (!%p463_p2), %s3868_s22, 1  ;;  %vm532_vm0 = vcmask (!%p463_p2), 130048   ;;  %s6952_s30 = sld [smem:[#allocation2_spill]] (!%p463_p2)  ;;  %vm726_vm1 = vcmask (!%p463_p2), 523264  }
   0x7   : > { %466 = sbr.rel (%p463_p2) target bundleno = 3470 (0xd8e), region = 84  ;;  %v4991_v2 = vpack.c.bf16 (!%p463_p2), %v531_v1, %v530_v0  ;;  %s5566_s17 = smov (!%p463_p2), 112   ;;  %v678_v21 = vld [vmem:[%s6936_s2] sm:$0xff] (!%p463_p2)  ;;  %v1363_v29 = vld [vmem:[%s6939_s5 + $0x8] sm:$0xff] (!%p463_p2)  ;;  %v5568_v30 = vmov (!%p463_p2), 0   ;;  %v1365_v31 = vld [vmem:[%s6939_s5 + $0x18] sm:$0xff] (!%p463_p2) }
   0x8   : > { %4403 = vmatprep.mubr.msk.f32.mxu1 (!%p463_p2), %vm726_vm1, %v678_v21  ;;  %s5567_s20 = smov (!%p463_p2), 96   ;;  %v1362_v28 = vld [vmem:[%s6939_s5] sm:$0xff] (!%p463_p2)  ;;  %5421 = vset.pattern.permute.xlu1 (!%p463_p2), %v5568_v30  ;;  %v1364_v32 = vld [vmem:[%s6939_s5 + $0x10] sm:$0xff] (!%p463_p2)  ;;  %v1367_v33 = vld [vmem:[%s6939_s5 + $0x28] sm:$0xff] (!%p463_p2)  ;;  %vm2810_vm2 = vcmask (!%p463_p2), 785408   ;;  %vm2972_vm3 = vcmask (!%p463_p2), 261120  }
   0x9   : > { %4992 = vmatprep.subr.bf16.mxu0 (!%p463_p2), %v4991_v2  ;;  %5420 = vset.pattern.permute.xlu0 (!%p463_p2), %v5568_v30  ;;  %v1366_v34 = vld [vmem:[%s6939_s5 + $0x20] sm:$0xff] (!%p463_p2)  ;;  %v1369_v35 = vld [vmem:[%s6939_s5 + $0x38] sm:$0xff] (!%p463_p2)  ;;  %v1368_v36 = vld [vmem:[%s6939_s5 + $0x30] sm:$0xff] (!%p463_p2) }
   0xa   : > { %4994 = vmatpush3.bf16.msra.mxu0 (!%p463_p2), %v4991_v2  ;;  %v1371_v38 = vld [vmem:[%s6939_s5 + $0x48] sm:$0xff] (!%p463_p2)  ;;  %v1370_v39 = vld [vmem:[%s6939_s5 + $0x40] sm:$0xff] (!%p463_p2)  ;;  %v1373_v44 = vld [vmem:[%s6939_s5 + $0x58] sm:$0xff] (!%p463_p2) }
   0xb   : > { %v1372_v45 = vld [vmem:[%s6939_s5 + $0x50] sm:$0xff] (!%p463_p2)  ;;  %v1375_v50 = vld [vmem:[%s6939_s5 + $0x68] sm:$0xff] (!%p463_p2)  ;;  %v1374_v51 = vld [vmem:[%s6939_s5 + $0x60] sm:$0xff] (!%p463_p2) }
   0xc   : > { %v1377_v56 = vld [vmem:[%s6939_s5 + $0x78] sm:$0xff] (!%p463_p2)  ;;  %v1376_v57 = vld [vmem:[%s6939_s5 + $0x70] sm:$0xff] (!%p463_p2)  ;;  %v679_v61 = vld [vmem:[%s6936_s2 + $0x8] sm:$0xff] (!%p463_p2) }
   0xd   : > { %v680_v62 = vld [vmem:[%s6936_s2 + $0x10] sm:$0xff] (!%p463_p2)  ;;  %v681_v63 = vld [vmem:[%s6936_s2 + $0x18] sm:$0xff] (!%p463_p2)  ;;  %v682_v0 = vld [vmem:[%s6936_s2 + $0x20] sm:$0xff] (!%p463_p2) }
   0xe   : > { %s6954_s22 = smov (!%p512_p3, %s3868_s22), 1  ;;  %v683_v2 = vld [vmem:[%s6936_s2 + $0x28] sm:$0xff] }
   0xf   : > { %s4010_s27 = sshll.u32 %s6954_s22, 6  ;;  %v663_v21 = vld [vmem:[%s6935_s1 + $0x8] sm:$0xff]  ;;  %s5367_s25 = smul.u32 96, %s6954_s22 }
  0x10   : > { %s516_s0 = scalar_lea.vmem %s6952_s30, %s4010_s27 }
  0x11   : > { %v522_v3 = vld [vmem:[%s516_s0] sm:$0xff]  ;;  %v523_v4 = vld [vmem:[%s516_s0 + $0x8] sm:$0xff]  ;;  %v524_v5 = vld [vmem:[%s516_s0 + $0x10] sm:$0xff]  ;;  %s6905_s28 = scalar_lea.vmem %s6950_s16, %s5367_s25 }
  0x12   : > { %4375 = vmatprep.mubr.msk.f32.mxu0 %vm532_vm0, %v522_v3  ;;  %v525_v6 = vld [vmem:[%s516_s0 + $0x18] sm:$0xff]  ;;  %v526_v7 = vld [vmem:[%s516_s0 + $0x20] sm:$0xff]  ;;  %v527_v8 = vld [vmem:[%s516_s0 + $0x28] sm:$0xff] }
  0x13   : > { %4376 = vmatmul.mubr.msk.f32.vlgmr.msra.gmra.mrb[0].mxu0 %vm532_vm0, %v523_v4  ;;  %v528_v9 = vld [vmem:[%s516_s0 + $0x30] sm:$0xff]  ;;  %v529_v10 = vld [vmem:[%s516_s0 + $0x38] sm:$0xff]  ;;  %s5569_s0 = smov 64  }
  0x14   : > { %4378 = vmatprep.mubr.msk.f32.mxu0 %vm532_vm0, %v524_v5  ;;  %v684_v3 = vld [vmem:[%s6936_s2 + $0x30] sm:$0xff] }
  0x17   : > { %4379 = vmatmul.mubr.msk.f32.gmra.mrb[2].mxu0 %vm532_vm0, %v525_v6  ;;  %v685_v6 = vld [vmem:[%s6936_s2 + $0x38] sm:$0xff] }
  0x18   : > { %4381 = vmatprep.mubr.msk.f32.mxu0 %vm532_vm0, %v526_v7  ;;  %v686_v7 = vld [vmem:[%s6936_s2 + $0x40] sm:$0xff] }
  0x1b   : > { %4382 = vmatmul.mubr.msk.f32.gmra.mrb[4].mxu0 %vm532_vm0, %v527_v8 }
  0x1c   : > { %4384 = vmatprep.mubr.msk.f32.mxu0 %vm532_vm0, %v528_v9  ;;  %v687_v9 = vld [vmem:[%s6936_s2 + $0x48] sm:$0xff] }
  0x1f   : > { %4385 = vmatmul.mubr.msk.f32.gmra.mrb[6].mxu0 %vm532_vm0, %v529_v10  ;;  %v688_v10 = vld [vmem:[%s6936_s2 + $0x50] sm:$0xff] }
  0xe6   : > { %v4377_v11 = vpop.f32.mrb[0].mxu0 }
  0xe7   : > { %v623_v12 = vpop.f32.mrb[1].mxu0 }
  0xe8   : > { %v5400_v13 = vpack.i.bf16 %v4377_v11, %v623_v12  ;;  %v5683_v14 = vpack.c.bf16 %v4377_v11, %v623_v12  ;;  %v689_v11 = vld [vmem:[%s6936_s2 + $0x58] sm:$0xff]  ;;  %v690_v12 = vld [vmem:[%s6936_s2 + $0x60] sm:$0xff] }
  0xea   : > { %5381 = vrot.lane.b32.xlu0 %v5400_v13, %s5566_s17  ;;  %v4380_v15 = vpop.f32.mrb[2].mxu0 }
  0xeb   : > { %v633_v16 = vpop.f32.mrb[3].mxu0 }
  0xec   : > { %v5405_v17 = vpack.i.bf16 %v4380_v15, %v633_v16  ;;  %v5685_v18 = vpack.c.bf16 %v4380_v15, %v633_v16  ;;  %v693_v16 = vld [vmem:[%s6936_s2 + $0x78] sm:$0xff] }
  0xee   : > { %5386 = vrot.lane.b32.xlu0 %v5405_v17, %s5566_s17  ;;  %v4383_v19 = vpop.f32.mrb[4].mxu0 }
  0xef   : > { %v643_v20 = vpop.f32.mrb[5].mxu0 }
  0xf0   : > { %v5410_v22 = vpack.i.bf16 %v4383_v19, %v643_v20  ;;  %v5690_v23 = vpack.c.bf16 %v4383_v19, %v643_v20 }
  0xf2   : > { %5401 = vrot.lane.b32.xlu0 %v5400_v13, %s5567_s20  ;;  %5391 = vrot.lane.b32.xlu1 %v5410_v22, %s5566_s17  ;;  %v4386_v24 = vpop.f32.mrb[6].mxu0  ;;  %v691_v13 = vld [vmem:[%s6936_s2 + $0x68] sm:$0xff] }
  0xf3   : > { %v653_v25 = vpop.f32.mrb[7].mxu0 }
  0xf4   : > { %v5415_v26 = vpack.i.bf16 %v4386_v24, %v653_v25  ;;  %v5694_v27 = vpack.c.bf16 %v4386_v24, %v653_v25 }
  0xf6   : > { %5411 = vrot.lane.b32.xlu0 %v5410_v22, %s5567_s20  ;;  %5396 = vrot.lane.b32.xlu1 %v5415_v26, %s5566_s17  ;;  %v664_v22 = vld [vmem:[%s6935_s1 + $0x10] sm:$0xff] }
  0xfa   : > { %5406 = vrot.lane.b32.xlu1 %v5405_v17, %s5567_s20  ;;  %1380 = vperm.xlu0 %5420, %v1362_v28   ;;  %v662_v17 = vld [vmem:[%s6935_s1] sm:$0xff] }
  0xfb   : > { %v666_v28 = vld [vmem:[%s6935_s1 + $0x20] sm:$0xff] }
  0xfe   : > { %5416 = vrot.lane.b32.xlu1 %v5415_v26, %s5567_s20  ;;  %1395 = vperm.xlu0 %5420, %v1365_v31  }
 0x102   : > { %1385 = vperm.xlu1 %5421, %v1363_v29   ;;  %1405 = vperm.xlu0 %5420, %v1367_v33   ;;  %v668_v33 = vld [vmem:[%s6935_s1 + $0x30] sm:$0xff] }
 0x106   : > { %1390 = vperm.xlu1 %5421, %v1364_v32   ;;  %1415 = vperm.xlu0 %5420, %v1369_v35   ;;  %v667_v32 = vld [vmem:[%s6935_s1 + $0x28] sm:$0xff]  ;;  %v669_v35 = vld [vmem:[%s6935_s1 + $0x38] sm:$0xff] }
 0x10a   : > { %1400 = vperm.xlu1 %5421, %v1366_v34   ;;  %1425 = vperm.xlu0 %5420, %v1371_v38   ;;  %v672_v38 = vld [vmem:[%s6935_s1 + $0x50] sm:$0xff] }
 0x10e   : > { %1410 = vperm.xlu1 %5421, %v1368_v36   ;;  %1435 = vperm.xlu0 %5420, %v1373_v44   ;;  %v670_v36 = vld [vmem:[%s6935_s1 + $0x40] sm:$0xff] }
 0x10f   : > { %v1113_v44 = vld [vmem:[%s6937_s3] sm:$0xff] }
 0x112   : > { %1420 = vperm.xlu1 %5421, %v1370_v39   ;;  %1445 = vperm.xlu0 %5420, %v1375_v50   ;;  %v673_v39 = vld [vmem:[%s6935_s1 + $0x58] sm:$0xff]  ;;  %v1119_v50 = vld [vmem:[%s6937_s3 + $0x30] sm:$0xff] }
 0x116   : > { %1430 = vperm.xlu1 %5421, %v1372_v45   ;;  %1455 = vperm.xlu0 %5420, %v1377_v56   ;;  %v1114_v45 = vld [vmem:[%s6937_s3 + $0x8] sm:$0xff]  ;;  %v1125_v56 = vld [vmem:[%s6937_s3 + $0x60] sm:$0xff] }
 0x11a   : > { %1440 = vperm.xlu1 %5421, %v1374_v51   ;;  %v1120_v51 = vld [vmem:[%s6937_s3 + $0x38] sm:$0xff] }
 0x11e   : > { %1450 = vperm.xlu1 %5421, %v1376_v57   ;;  %v1126_v57 = vld [vmem:[%s6937_s3 + $0x68] sm:$0xff] }
 0x15c   : > { %v5382_v37 = vpop.permute.xlu0 %5381 }
 0x15d   : > { %v5384_v40 = vunpack.i.h.bf16 %v5382_v37  ;;  %v5383_v41 = vunpack.i.l.bf16 %v5382_v37  ;;  %v671_v37 = vld [vmem:[%s6935_s1 + $0x48] sm:$0xff] }
 0x15f   : > { %v4995_v42 = vpack.c.bf16 %v5384_v40, %v5383_v41  ;;  %v674_v40 = vld [vmem:[%s6935_s1 + $0x60] sm:$0xff]  ;;  %v675_v41 = vld [vmem:[%s6935_s1 + $0x68] sm:$0xff] }
 0x160   : > { %v5387_v43 = vpop.permute.xlu0 %5386 }
 0x161   : > { %v5389_v46 = vunpack.i.h.bf16 %v5387_v43  ;;  %v5388_v47 = vunpack.i.l.bf16 %v5387_v43  ;;  %4996 = vmatprep.subr.bf16.mxu1 %v4995_v42  ;;  %v677_v43 = vld [vmem:[%s6935_s1 + $0x78] sm:$0xff] }
 0x162   : > { %4998 = vmatpush3.bf16.msra.mxu1 %v4995_v42  ;;  %v676_v42 = vld [vmem:[%s6935_s1 + $0x70] sm:$0xff] }
 0x163   : > { %v4999_v48 = vpack.c.bf16 %v5389_v46, %v5388_v47  ;;  %v1115_v46 = vld [vmem:[%s6937_s3 + $0x10] sm:$0xff]  ;;  %v1116_v47 = vld [vmem:[%s6937_s3 + $0x18] sm:$0xff] }
 0x164   : > { %v5392_v49 = vpop.permute.xlu1 %5391  ;;  %v5402_v1 = vpop.permute.xlu0 %5401 }
 0x165   : > { %v5394_v52 = vunpack.i.h.bf16 %v5392_v49  ;;  %v5393_v53 = vunpack.i.l.bf16 %v5392_v49  ;;  %5000 = vmatprep.subr.bf16.mxu1 %v4999_v48  ;;  %v5404_v4 = vunpack.i.h.bf16 %v5402_v1  ;;  %v5403_v5 = vunpack.i.l.bf16 %v5402_v1  ;;  %v1118_v49 = vld [vmem:[%s6937_s3 + $0x28] sm:$0xff] }
 0x166   : > { %5002 = vmatpush3.bf16.msra.mxu1 %v4999_v48  ;;  %v1117_v48 = vld [vmem:[%s6937_s3 + $0x20] sm:$0xff] }
 0x167   : > { %v5003_v54 = vpack.c.bf16 %v5394_v52, %v5393_v53  ;;  %v5027_v8 = vpack.c.bf16 %v5404_v4, %v5403_v5  ;;  %v1121_v52 = vld [vmem:[%s6937_s3 + $0x40] sm:$0xff]  ;;  %v1122_v53 = vld [vmem:[%s6937_s3 + $0x48] sm:$0xff] }
 0x168   : > { %v5397_v55 = vpop.permute.xlu1 %5396  ;;  %v5412_v20 = vpop.permute.xlu0 %5411 }
 0x169   : > { %v5399_v58 = vunpack.i.h.bf16 %v5397_v55  ;;  %v5398_v59 = vunpack.i.l.bf16 %v5397_v55  ;;  %5004 = vmatprep.subr.bf16.mxu1 %v5003_v54  ;;  %v5413_v24 = vunpack.i.l.bf16 %v5412_v20  ;;  %v1124_v55 = vld [vmem:[%s6937_s3 + $0x58] sm:$0xff] }
 0x16a   : > { %5006 = vmatpush3.bf16.msra.mxu1 %v5003_v54  ;;  %v1123_v54 = vld [vmem:[%s6937_s3 + $0x50] sm:$0xff] }
 0x16b   : > { %v5007_v60 = vpack.c.bf16 %v5399_v58, %v5398_v59  ;;  %v1127_v58 = vld [vmem:[%s6937_s3 + $0x70] sm:$0xff]  ;;  %v1128_v59 = vld [vmem:[%s6937_s3 + $0x78] sm:$0xff] }
 0x16c   : > { %v5407_v15 = vpop.permute.xlu1 %5406 }
 0x16d   : > { %5008 = vmatprep.subr.bf16.mxu1 %v5007_v60  ;;  %v5408_v19 = vunpack.i.l.bf16 %v5407_v15 }
 0x16e   : > { %5010 = vmatpush3.bf16.msra.mxu1 %v5007_v60  ;;  %v5946_v60 = vld [vmem:[%s6940_s6] sm:$0xff] }
 0x16f   : > { %5012 = vmatprep.subr.bf16.mxu1 %v5683_v14  ;;  %4539 = vmatprep.mubr.f32.mxu0 %v5946_v60 }
 0x170   : > { %v5417_v26 = vpop.permute.xlu1 %5416 }
 0x171   : > { %4404 = vmatmul.mubr.msk.f32.vlgmr.msra.gmra.mrb[0].mxu1 %vm726_vm1, %v679_v61  ;;  %v5419_v29 = vunpack.i.h.bf16 %v5417_v26  ;;  %v5418_v30 = vunpack.i.l.bf16 %v5417_v26 }
 0x172   : > { %5014 = vmatpush3.bf16.msra.mxu1 %v5683_v14  ;;  %4406 = vmatprep.mubr.msk.f32.mxu1 %vm726_vm1, %v680_v62  ;;  %v692_v14 = vld [vmem:[%s6936_s2 + $0x70] sm:$0xff] }
 0x173   : > { %5016 = vmatprep.subr.bf16.mxu1 %v5685_v18  ;;  %v5039_v34 = vpack.c.bf16 %v5419_v29, %v5418_v30 }
 0x175   : > { %4407 = vmatmul.mubr.msk.f32.gmra.mrb[2].mxu1 %vm726_vm1, %v681_v63 }
 0x176   : > { %5018 = vmatpush3.bf16.msra.mxu1 %v5685_v18  ;;  %4409 = vmatprep.mubr.msk.f32.mxu1 %vm726_vm1, %v682_v0  ;;  %v5409_v18 = vunpack.i.h.bf16 %v5407_v15 }
 0x177   : > { %5020 = vmatprep.subr.bf16.mxu1 %v5690_v23 }
 0x178   : > { %v5031_v25 = vpack.c.bf16 %v5409_v18, %v5408_v19 }
 0x179   : > { %4410 = vmatmul.mubr.msk.f32.gmra.mrb[4].mxu1 %vm726_vm1, %v683_v2  ;;  %v1381_v61 = vpop.permute.xlu0 %1380 }
 0x17a   : > { %5022 = vmatpush3.bf16.msra.mxu1 %v5690_v23  ;;  %4412 = vmatprep.mubr.msk.f32.mxu1 %vm726_vm1, %v684_v3  ;;  %v5414_v23 = vunpack.i.h.bf16 %v5412_v20 }
 0x17b   : > { %5024 = vmatprep.subr.bf16.mxu1 %v5694_v27 }
 0x17c   : > { %v5035_v31 = vpack.c.bf16 %v5414_v23, %v5413_v24 }
 0x17d   : > { %4413 = vmatmul.mubr.msk.f32.gmra.mrb[6].mxu1 %vm726_vm1, %v685_v6  ;;  %v1396_v63 = vpop.permute.xlu0 %1395 }
 0x17e   : > { %5026 = vmatpush3.bf16.msra.mxu1 %v5694_v27  ;;  %4415 = vmatprep.mubr.msk.f32.mxu1 %vm726_vm1, %v686_v7  ;;  %v665_v27 = vld [vmem:[%s6935_s1 + $0x18] sm:$0xff] }
 0x17f   : > { %5028 = vmatprep.subr.bf16.mxu1 %v5027_v8 }
 0x181   : > { %4416 = vmatmul.mubr.msk.f32.gmra.mrb[8].mxu1 %vm726_vm1, %v687_v9  ;;  %v1386_v62 = vpop.permute.xlu1 %1385  ;;  %v1406_v1 = vpop.permute.xlu0 %1405 }
 0x182   : > { %4418 = vmatprep.mubr.msk.f32.mxu1 %vm726_vm1, %v688_v10 }
 0x185   : > { %4419 = vmatmul.mubr.msk.f32.gmra.mrb[10].mxu1 %vm726_vm1, %v689_v11  ;;  %v1391_v0 = vpop.permute.xlu1 %1390 }
 0x186   : > { %4421 = vmatprep.mubr.msk.f32.mxu1 %vm726_vm1, %v690_v12 }
 0x189   : > { %4422 = vmatmul.mubr.msk.f32.gmra.mrb[12].mxu1 %vm726_vm1, %v691_v13  ;;  %v1401_v2 = vpop.permute.xlu1 %1400 }
 0x18a   : > { %4424 = vmatprep.mubr.msk.f32.mxu1 %vm726_vm1, %v692_v14 }
 0x18d   : > { %4425 = vmatmul.mubr.msk.f32.gmra.mrb[14].mxu1 %vm726_vm1, %v693_v16  ;;  %v1411_v11 = vpop.permute.xlu1 %1410 }
 0x18e   : > { %4443 = vmatprep.mubr.msk.f32.mxu1 %vm726_vm1, %v662_v17 }
 0x191   : > { %4444 = vmatmul.mubr.msk.f32.vlgmr.msra.gmra.mrb[0].mxu1 %vm726_vm1, %v663_v21  ;;  %v1421_v24 = vpop.permute.xlu1 %1420 }
 0x192   : > { %5030 = vmatpush3.bf16.msra.mxu1 %v5027_v8  ;;  %4446 = vmatprep.mubr.msk.f32.mxu1 %vm726_vm1, %v664_v22  ;;  %v1416_v8 = vpop.permute.xlu0 %1415 }
 0x193   : > { %5032 = vmatprep.subr.bf16.mxu1 %v5031_v25 }
 0x195   : > { %4447 = vmatmul.mubr.msk.f32.gmra.mrb[2].mxu1 %vm726_vm1, %v665_v27 }
 0x196   : > { %5034 = vmatpush3.bf16.msra.mxu1 %v5031_v25  ;;  %4449 = vmatprep.mubr.msk.f32.mxu1 %vm726_vm1, %v666_v28  ;;  %v1426_v21 = vpop.permute.xlu0 %1425 }
 0x197   : > { %5036 = vmatprep.subr.bf16.mxu1 %v5035_v31 }
 0x199   : > { %4450 = vmatmul.mubr.msk.f32.gmra.mrb[4].mxu1 %vm726_vm1, %v667_v32 }
 0x19a   : > { %5038 = vmatpush3.bf16.msra.mxu1 %v5035_v31  ;;  %4452 = vmatprep.mubr.msk.f32.mxu1 %vm726_vm1, %v668_v33  ;;  %v1436_v33 = vpop.permute.xlu0 %1435 }
 0x19b   : > { %5040 = vmatprep.subr.bf16.mxu1 %v5039_v34 }
 0x19d   : > { %4453 = vmatmul.mubr.msk.f32.gmra.mrb[6].mxu1 %vm726_vm1, %v669_v35 }
 0x19e   : > { %5042 = vmatpush3.bf16.msra.mxu1 %v5039_v34  ;;  %4455 = vmatprep.mubr.msk.f32.mxu1 %vm726_vm1, %v670_v36  ;;  %v1431_v36 = vpop.permute.xlu1 %1430 }
 0x1a1   : > { %4456 = vmatmul.mubr.msk.f32.gmra.mrb[8].mxu1 %vm726_vm1, %v671_v37 }
 0x1a2   : > { %4458 = vmatprep.mubr.msk.f32.mxu1 %vm726_vm1, %v672_v38 }
 0x1a5   : > { %4459 = vmatmul.mubr.msk.f32.gmra.mrb[10].mxu1 %vm726_vm1, %v673_v39 }
 0x1a6   : > { %4461 = vmatprep.mubr.msk.f32.mxu1 %vm726_vm1, %v674_v40 }
 0x1a9   : > { %4462 = vmatmul.mubr.msk.f32.gmra.mrb[12].mxu1 %vm726_vm1, %v675_v41 }
 0x1aa   : > { %4464 = vmatprep.mubr.msk.f32.mxu1 %vm726_vm1, %v676_v42 }
 0x1ad   : > { %4465 = vmatmul.mubr.msk.f32.gmra.mrb[14].mxu1 %vm726_vm1, %v677_v43 }
 0x1ae   : > { %4483 = vmatprep.mubr.msk.f32.mxu1 %vm726_vm1, %v1113_v44 }
 0x1b1   : > { %4484 = vmatmul.mubr.msk.f32.vlgmr.msra.gmra.mrb[0].mxu1 %vm726_vm1, %v1114_v45 }
 0x1b2   : > { %4486 = vmatprep.mubr.msk.f32.mxu1 %vm726_vm1, %v1115_v46  ;;  %v1446_v46 = vpop.permute.xlu0 %1445 }
 0x1b5   : > { %4487 = vmatmul.mubr.msk.f32.gmra.mrb[2].mxu1 %vm726_vm1, %v1116_v47 }
 0x1b6   : > { %4489 = vmatprep.mubr.msk.f32.mxu1 %vm726_vm1, %v1117_v48 }
 0x1b9   : > { %4490 = vmatmul.mubr.msk.f32.gmra.mrb[4].mxu1 %vm726_vm1, %v1118_v49  ;;  %v1441_v49 = vpop.permute.xlu1 %1440 }
 0x1ba   : > { %4492 = vmatprep.mubr.msk.f32.mxu1 %vm726_vm1, %v1119_v50 }
 0x1bd   : > { %4493 = vmatmul.mubr.msk.f32.gmra.mrb[6].mxu1 %vm726_vm1, %v1120_v51 }
 0x1be   : > { %4495 = vmatprep.mubr.msk.f32.mxu1 %vm726_vm1, %v1121_v52 }
 0x1c1   : > { %4496 = vmatmul.mubr.msk.f32.gmra.mrb[8].mxu1 %vm726_vm1, %v1122_v53 }
 0x1c2   : > { %4498 = vmatprep.mubr.msk.f32.mxu1 %vm726_vm1, %v1123_v54 }
 0x1c5   : > { %4499 = vmatmul.mubr.msk.f32.gmra.mrb[10].mxu1 %vm726_vm1, %v1124_v55 }
 0x1c6   : > { %4501 = vmatprep.mubr.msk.f32.mxu1 %vm726_vm1, %v1125_v56 }
 0x1c9   : > { %4502 = vmatmul.mubr.msk.f32.gmra.mrb[12].mxu1 %vm726_vm1, %v1126_v57 }
 0x1ca   : > { %4504 = vmatprep.mubr.msk.f32.mxu1 %vm726_vm1, %v1127_v58  ;;  %v1456_v58 = vpop.permute.xlu0 %1455 }
 0x1cd   : > { %4505 = vmatmul.mubr.msk.f32.gmra.mrb[14].mxu1 %vm726_vm1, %v1128_v59 }
 0x284   : > { %v4485_v3 = vpop.f32.mrb[0].mxu1 }
 0x285   : > { %v5949_v4 = vadd.f32 %v4485_v3, %v1386_v62  ;;  %v1267_v5 = vpop.f32.mrb[1].mxu1  ;;  %v1451_v62 = vpop.permute.xlu1 %1450 }
 0x286   : > { %v5951_v6 = vadd.f32 %v1381_v61, %v1267_v5 }
 0x287   : > { %v1475_v7 = vmax.f32 %v5949_v4, 0.0 }
 0x288   : > { %v1474_v9 = vmax.f32 %v5951_v6, 0.0  ;;  %v4488_v10 = vpop.f32.mrb[2].mxu1 }
 0x289   : > { %v5955_v12 = vadd.f32 %v4488_v10, %v1396_v63  ;;  %v1277_v13 = vpop.f32.mrb[3].mxu1  ;;  %v6032_v10 = vld [vmem:[%s6940_s6 + $0x8] sm:$0xff] }
 0x28a   : > { %v5043_v14 = vpack.c.bf16 %v1475_v7, %v1474_v9  ;;  %v5961_v15 = vadd.f32 %v1391_v0, %v1277_v13  ;;  %v6044_v13 = vld [vmem:[%s6940_s6 + $0x18] sm:$0xff] }
 0x28b   : > { %v1477_v16 = vmax.f32 %v5955_v12, 0.0 }
 0x28c   : > { %v1476_v17 = vmax.f32 %v5961_v15, 0.0  ;;  %v4491_v18 = vpop.f32.mrb[4].mxu1  ;;  %5044 = vmatprep.subr.bf16.mxu0 %v5043_v14 }
 0x28d   : > { %v5965_v19 = vadd.f32 %v4491_v18, %v1406_v1  ;;  %v1287_v20 = vpop.f32.mrb[5].mxu1  ;;  %5046 = vmatpush3.bf16.msra.mxu0 %v5043_v14  ;;  %v6049_v14 = vld [vmem:[%s6940_s6 + $0x20] sm:$0xff]  ;;  %v6056_v18 = vld [vmem:[%s6940_s6 + $0x28] sm:$0xff] }
 0x28e   : > { %v5047_v22 = vpack.c.bf16 %v1477_v16, %v1476_v17  ;;  %v5971_v23 = vadd.f32 %v1401_v2, %v1287_v20  ;;  %v6061_v20 = vld [vmem:[%s6940_s6 + $0x30] sm:$0xff] }
 0x28f   : > { %v1479_v25 = vmax.f32 %v5965_v19, 0.0 }
 0x290   : > { %v1478_v26 = vmax.f32 %v5971_v23, 0.0  ;;  %v4494_v27 = vpop.f32.mrb[6].mxu1  ;;  %5048 = vmatprep.subr.bf16.mxu0 %v5047_v22 }
 0x291   : > { %v5975_v28 = vadd.f32 %v4494_v27, %v1416_v8  ;;  %v1297_v29 = vpop.f32.mrb[7].mxu1  ;;  %5050 = vmatpush3.bf16.msra.mxu0 %v5047_v22  ;;  %v6073_v22 = vld [vmem:[%s6940_s6 + $0x40] sm:$0xff]  ;;  %v6085_v27 = vld [vmem:[%s6940_s6 + $0x50] sm:$0xff] }
 0x292   : > { %v5051_v30 = vpack.c.bf16 %v1479_v25, %v1478_v26  ;;  %v5981_v31 = vadd.f32 %v1411_v11, %v1297_v29  ;;  %v6037_v11 = vld [vmem:[%s6940_s6 + $0x10] sm:$0xff]  ;;  %v6092_v29 = vld [vmem:[%s6940_s6 + $0x58] sm:$0xff] }
 0x293   : > { %v1481_v32 = vmax.f32 %v5975_v28, 0.0 }
 0x294   : > { %v1480_v34 = vmax.f32 %v5981_v31, 0.0  ;;  %v4497_v35 = vpop.f32.mrb[8].mxu1  ;;  %5052 = vmatprep.subr.bf16.mxu0 %v5051_v30 }
 0x295   : > { %v5985_v37 = vadd.f32 %v4497_v35, %v1426_v21  ;;  %v1307_v38 = vpop.f32.mrb[9].mxu1  ;;  %5054 = vmatpush3.bf16.msra.mxu0 %v5051_v30  ;;  %v6068_v21 = vld [vmem:[%s6940_s6 + $0x38] sm:$0xff]  ;;  %v6097_v30 = vld [vmem:[%s6940_s6 + $0x60] sm:$0xff]  ;;  %v6109_v35 = vld [vmem:[%s6940_s6 + $0x70] sm:$0xff] }
 0x296   : > { %v5055_v39 = vpack.c.bf16 %v1481_v32, %v1480_v34  ;;  %v5991_v40 = vadd.f32 %v1421_v24, %v1307_v38  ;;  %v6080_v24 = vld [vmem:[%s6940_s6 + $0x48] sm:$0xff] }
 0x297   : > { %v1483_v41 = vmax.f32 %v5985_v37, 0.0 }
 0x298   : > { %v1482_v42 = vmax.f32 %v5991_v40, 0.0  ;;  %v4500_v43 = vpop.f32.mrb[10].mxu1  ;;  %5056 = vmatprep.subr.bf16.mxu0 %v5055_v39 }
 0x299   : > { %v5995_v44 = vadd.f32 %v4500_v43, %v1436_v33  ;;  %v1317_v45 = vpop.f32.mrb[11].mxu1  ;;  %5058 = vmatpush3.bf16.msra.mxu0 %v5055_v39  ;;  %v6104_v33 = vld [vmem:[%s6940_s6 + $0x68] sm:$0xff] }
 0x29a   : > { %v5059_v47 = vpack.c.bf16 %v1483_v41, %v1482_v42  ;;  %v6001_v48 = vadd.f32 %v1431_v36, %v1317_v45  ;;  %v6116_v36 = vld [vmem:[%s6940_s6 + $0x78] sm:$0xff] }
 0x29b   : > { %v1485_v50 = vmax.f32 %v5995_v44, 0.0 }
 0x29c   : > { %v1484_v51 = vmax.f32 %v6001_v48, 0.0  ;;  %v4503_v52 = vpop.f32.mrb[12].mxu1  ;;  %5060 = vmatprep.subr.bf16.mxu0 %v5059_v47 }
 0x29d   : > { %v6005_v53 = vadd.f32 %v4503_v52, %v1446_v46  ;;  %v1327_v54 = vpop.f32.mrb[13].mxu1  ;;  %5062 = vmatpush3.bf16.msra.mxu0 %v5059_v47 }
 0x29e   : > { %v5063_v55 = vpack.c.bf16 %v1485_v50, %v1484_v51  ;;  %v6011_v56 = vadd.f32 %v1441_v49, %v1327_v54 }
 0x29f   : > { %v1487_v57 = vmax.f32 %v6005_v53, 0.0 }
 0x2a0   : > { %v1486_v59 = vmax.f32 %v6011_v56, 0.0  ;;  %v4506_v61 = vpop.f32.mrb[14].mxu1  ;;  %5064 = vmatprep.subr.bf16.mxu0 %v5063_v55 }
 0x2a1   : > { %v6015_v63 = vadd.f32 %v4506_v61, %v1456_v58  ;;  %v1337_v0 = vpop.f32.mrb[15].mxu1  ;;  %5066 = vmatpush3.bf16.msra.mxu0 %v5063_v55 }
 0x2a2   : > { %v5067_v1 = vpack.c.bf16 %v1487_v57, %v1486_v59  ;;  %v6021_v2 = vadd.f32 %v1451_v62, %v1337_v0 }
 0x2a3   : > { %v1489_v3 = vmax.f32 %v6015_v63, 0.0  ;;  %v1972_v63 = vld [vmem:[%s6944_s10] sm:$0xff] }
 0x2a4   : > { %v1488_v5 = vmax.f32 %v6021_v2, 0.0  ;;  %5068 = vmatprep.subr.bf16.mxu0 %v5067_v1  ;;  %v1973_v2 = vld [vmem:[%s6944_s10 + $0x8] sm:$0xff] }
 0x2a5   : > { %5070 = vmatpush3.bf16.msra.mxu0 %v5067_v1 }
 0x2a6   : > { %v5071_v8 = vpack.c.bf16 %v1489_v3, %v1488_v5 }
 0x2a8   : > { %5072 = vmatprep.subr.bf16.mxu0 %v5071_v8 }
 0x2a9   : > { %5074 = vmatpush3.bf16.msra.mxu0 %v5071_v8 }
 0x2ac   : > { %4540 = vmatmul.mubr.f32.vlgmr.msra.gmra.mrb[8].mxu0 %v6032_v10 }
 0x2ad   : > { %4542 = vmatprep.mubr.f32.mxu0 %v6037_v11 }
 0x2b0   : > { %4543 = vmatmul.mubr.f32.gmra.mrb[10].mxu0 %v6044_v13 }
 0x2b1   : > { %4545 = vmatprep.mubr.f32.mxu0 %v6049_v14 }
 0x2b4   : > { %4546 = vmatmul.mubr.f32.gmra.mrb[12].mxu0 %v6056_v18 }
 0x2b5   : > { %4548 = vmatprep.mubr.f32.mxu0 %v6061_v20 }
 0x2b8   : > { %4549 = vmatmul.mubr.f32.gmra.mrb[14].mxu0 %v6068_v21 }
 0x2b9   : > { %4551 = vmatprep.mubr.f32.mxu0 %v6073_v22 }
 0x2bc   : > { %4552 = vmatmul.mubr.f32.gmra.mrb[16].mxu0 %v6080_v24 }
 0x2bd   : > { %4554 = vmatprep.mubr.f32.mxu0 %v6085_v27 }
 0x2c0   : > { %4555 = vmatmul.mubr.f32.gmra.mrb[18].mxu0 %v6092_v29 }
 0x2c1   : > { %4557 = vmatprep.mubr.f32.mxu0 %v6097_v30 }
 0x2c4   : > { %4558 = vmatmul.mubr.f32.gmra.mrb[20].mxu0 %v6104_v33 }
 0x2c5   : > { %4560 = vmatprep.mubr.f32.mxu0 %v6109_v35 }
 0x2c8   : > { %4561 = vmatmul.mubr.f32.gmra.mrb[22].mxu0 %v6116_v36 }
 0x2c9   : > { %4595 = vmatprep.mubr.f32.mxu0 %v5946_v60 }
 0x37f   : > { %v4541_v38 = vpop.f32.mrb[8].mxu0 }
 0x380   : > { %v1572_v39 = vpop.f32.mrb[9].mxu0  ;;  %v1654_v43 = vsel %vm532_vm0, %v4541_v38, 0.0 }
 0x381   : > { %1655 = vadd.xlane.f32.xlu0 %v1654_v43  ;;  %v1651_v45 = vsel %vm532_vm0, %v1572_v39, 0.0 }
 0x382   : > { %1652 = vadd.xlane.f32.xlu1 %v1651_v45 }
 0x383   : > { %v4544_v46 = vpop.f32.mrb[10].mxu0 }
 0x384   : > { %v1582_v47 = vpop.f32.mrb[11].mxu0  ;;  %v1660_v49 = vsel %vm532_vm0, %v4544_v46, 0.0 }
 0x385   : > { %v1657_v52 = vsel %vm532_vm0, %v1582_v47, 0.0 }
 0x386   : > { %1661 = vadd.xlane.f32.xlu1 %v1660_v49  ;;  %1658 = vadd.xlane.f32.xlu0 %v1657_v52 }
 0x387   : > { %v4547_v54 = vpop.f32.mrb[12].mxu0 }
 0x388   : > { %v1592_v55 = vpop.f32.mrb[13].mxu0  ;;  %v1666_v60 = vsel %vm532_vm0, %v4547_v54, 0.0 }
 0x389   : > { %v1663_v58 = vsel %vm532_vm0, %v1592_v55, 0.0 }
 0x38a   : > { %1667 = vadd.xlane.f32.xlu1 %v1666_v60  ;;  %1664 = vadd.xlane.f32.xlu0 %v1663_v58 }
 0x38b   : > { %v4550_v61 = vpop.f32.mrb[14].mxu0 }
 0x38c   : > { %v1602_v62 = vpop.f32.mrb[15].mxu0  ;;  %v1672_v0 = vsel %vm532_vm0, %v4550_v61, 0.0 }
 0x38d   : > { %v1669_v1 = vsel %vm532_vm0, %v1602_v62, 0.0 }
 0x38e   : > { %1673 = vadd.xlane.f32.xlu1 %v1672_v0  ;;  %1670 = vadd.xlane.f32.xlu0 %v1669_v1 }
 0x38f   : > { %v4553_v8 = vpop.f32.mrb[16].mxu0 }
 0x390   : > { %v1612_v38 = vpop.f32.mrb[17].mxu0  ;;  %v1678_v39 = vsel %vm532_vm0, %v4553_v8, 0.0 }
 0x391   : > { %v1675_v43 = vsel %vm532_vm0, %v1612_v38, 0.0 }
 0x392   : > { %1679 = vadd.xlane.f32.xlu1 %v1678_v39  ;;  %1676 = vadd.xlane.f32.xlu0 %v1675_v43 }
 0x393   : > { %v4556_v45 = vpop.f32.mrb[18].mxu0 }
 0x394   : > { %v1622_v46 = vpop.f32.mrb[19].mxu0  ;;  %v1684_v47 = vsel %vm532_vm0, %v4556_v45, 0.0 }
 0x395   : > { %v1681_v49 = vsel %vm532_vm0, %v1622_v46, 0.0 }
 0x396   : > { %1685 = vadd.xlane.f32.xlu1 %v1684_v47  ;;  %1682 = vadd.xlane.f32.xlu0 %v1681_v49 }
 0x397   : > { %v4559_v52 = vpop.f32.mrb[20].mxu0 }
 0x398   : > { %v1632_v54 = vpop.f32.mrb[21].mxu0  ;;  %v1690_v55 = vsel %vm532_vm0, %v4559_v52, 0.0 }
 0x399   : > { %v1687_v60 = vsel %vm532_vm0, %v1632_v54, 0.0 }
 0x39a   : > { %1691 = vadd.xlane.f32.xlu1 %v1690_v55  ;;  %1688 = vadd.xlane.f32.xlu0 %v1687_v60 }
 0x39b   : > { %v4562_v58 = vpop.f32.mrb[22].mxu0 }
 0x39c   : > { %v1642_v61 = vpop.f32.mrb[23].mxu0  ;;  %v1696_v62 = vsel %vm532_vm0, %v4562_v58, 0.0 }
 0x39d   : > { %v1693_v0 = vsel %vm532_vm0, %v1642_v61, 0.0 }
 0x39e   : > { %1697 = vadd.xlane.f32.xlu1 %v1696_v62  ;;  %1694 = vadd.xlane.f32.xlu0 %v1693_v0 }
 0x40e   : > { %v1656_v1 = vpop.xlane.xlu0 %1655 }
 0x40f   : > { %v6138_v8 = vsub.f32 %v1475_v7, %v1656_v1  ;;  %v1653_v38 = vpop.xlane.xlu1 %1652 }
 0x410   : > { %v6142_v39 = vsub.f32 %v1474_v9, %v1653_v38 }
 0x411   : > { %v1716_v43 = vmul.f32 %v6138_v8, %v6138_v8 }
 0x412   : > { %v1715_v45 = vmul.f32 %v6142_v39, %v6142_v39 }
 0x413   : > { %v1662_v46 = vpop.xlane.xlu1 %1661  ;;  %v1659_v47 = vpop.xlane.xlu0 %1658 }
 0x414   : > { %v6150_v49 = vsub.f32 %v1477_v16, %v1662_v46  ;;  %v6154_v4 = vsub.f32 %v1476_v17, %v1659_v47  ;;  %v5075_v7 = vpack.c.bf16 %v1716_v43, %v1715_v45 }
 0x416   : > { %v1718_v6 = vmul.f32 %v6150_v49, %v6150_v49  ;;  %v1717_v9 = vmul.f32 %v6154_v4, %v6154_v4  ;;  %5076 = vmatprep.subr.bf16.mxu0 %v5075_v7 }
 0x417   : > { %5078 = vmatpush3.bf16.msra.mxu0 %v5075_v7  ;;  %v1668_v52 = vpop.xlane.xlu1 %1667  ;;  %v1665_v54 = vpop.xlane.xlu0 %1664 }
 0x418   : > { %v6162_v12 = vsub.f32 %v1479_v25, %v1668_v52  ;;  %v6166_v15 = vsub.f32 %v1478_v26, %v1665_v54  ;;  %v5079_v16 = vpack.c.bf16 %v1718_v6, %v1717_v9 }
 0x41a   : > { %v1720_v17 = vmul.f32 %v6162_v12, %v6162_v12  ;;  %v1719_v55 = vmul.f32 %v6166_v15, %v6166_v15  ;;  %5080 = vmatprep.subr.bf16.mxu0 %v5079_v16 }
 0x41b   : > { %5082 = vmatpush3.bf16.msra.mxu0 %v5079_v16  ;;  %v1674_v60 = vpop.xlane.xlu1 %1673  ;;  %v1671_v58 = vpop.xlane.xlu0 %1670 }
 0x41c   : > { %v6174_v19 = vsub.f32 %v1481_v32, %v1674_v60  ;;  %v6178_v23 = vsub.f32 %v1480_v34, %v1671_v58  ;;  %v5083_v25 = vpack.c.bf16 %v1720_v17, %v1719_v55 }
 0x41e   : > { %v1722_v26 = vmul.f32 %v6174_v19, %v6174_v19  ;;  %v1721_v61 = vmul.f32 %v6178_v23, %v6178_v23  ;;  %5084 = vmatprep.subr.bf16.mxu0 %v5083_v25 }
 0x41f   : > { %5086 = vmatpush3.bf16.msra.mxu0 %v5083_v25  ;;  %v1680_v62 = vpop.xlane.xlu1 %1679  ;;  %v1677_v0 = vpop.xlane.xlu0 %1676 }
 0x420   : > { %v6186_v28 = vsub.f32 %v1483_v41, %v1680_v62  ;;  %v6190_v31 = vsub.f32 %v1482_v42, %v1677_v0  ;;  %v5087_v32 = vpack.c.bf16 %v1722_v26, %v1721_v61 }
 0x422   : > { %v1724_v34 = vmul.f32 %v6186_v28, %v6186_v28  ;;  %v1723_v1 = vmul.f32 %v6190_v31, %v6190_v31  ;;  %5088 = vmatprep.subr.bf16.mxu0 %v5087_v32 }
 0x423   : > { %5090 = vmatpush3.bf16.msra.mxu0 %v5087_v32  ;;  %v1686_v38 = vpop.xlane.xlu1 %1685  ;;  %v1683_v43 = vpop.xlane.xlu0 %1682 }
 0x424   : > { %v6198_v37 = vsub.f32 %v1485_v50, %v1686_v38  ;;  %v6202_v40 = vsub.f32 %v1484_v51, %v1683_v43  ;;  %v5091_v41 = vpack.c.bf16 %v1724_v34, %v1723_v1 }
 0x426   : > { %v1726_v42 = vmul.f32 %v6198_v37, %v6198_v37  ;;  %v1725_v45 = vmul.f32 %v6202_v40, %v6202_v40  ;;  %5092 = vmatprep.subr.bf16.mxu0 %v5091_v41 }
 0x427   : > { %5094 = vmatpush3.bf16.msra.mxu0 %v5091_v41  ;;  %v1692_v46 = vpop.xlane.xlu1 %1691  ;;  %v1689_v47 = vpop.xlane.xlu0 %1688 }
 0x428   : > { %v6210_v44 = vsub.f32 %v1487_v57, %v1692_v46  ;;  %v6214_v48 = vsub.f32 %v1486_v59, %v1689_v47  ;;  %v5095_v50 = vpack.c.bf16 %v1726_v42, %v1725_v45 }
 0x42a   : > { %v1728_v51 = vmul.f32 %v6210_v44, %v6210_v44  ;;  %v1727_v7 = vmul.f32 %v6214_v48, %v6214_v48  ;;  %5096 = vmatprep.subr.bf16.mxu0 %v5095_v50 }
 0x42b   : > { %5098 = vmatpush3.bf16.msra.mxu0 %v5095_v50  ;;  %v1698_v6 = vpop.xlane.xlu1 %1697  ;;  %v1695_v9 = vpop.xlane.xlu0 %1694 }
 0x42c   : > { %v6222_v53 = vsub.f32 %v1489_v3, %v1698_v6  ;;  %v6226_v56 = vsub.f32 %v1488_v5, %v1695_v9  ;;  %v5099_v57 = vpack.c.bf16 %v1728_v51, %v1727_v7  ;;  %v5107_v3 = vpack.c.bf16 %v1973_v2, %v1972_v63 }
 0x42e   : > { %v1730_v59 = vmul.f32 %v6222_v53, %v6222_v53  ;;  %v1729_v52 = vmul.f32 %v6226_v56, %v6226_v56  ;;  %5100 = vmatprep.subr.bf16.mxu0 %v5099_v57 }
 0x42f   : > { %5102 = vmatpush3.bf16.msra.mxu0 %v5099_v57 }
 0x430   : > { %v5103_v54 = vpack.c.bf16 %v1730_v59, %v1729_v52 }
 0x432   : > { %5104 = vmatprep.subr.bf16.mxu0 %v5103_v54 }
 0x433   : > { %5106 = vmatpush3.bf16.msra.mxu0 %v5103_v54 }
 0x434   : > { %5108 = vmatprep.subr.bf16.mxu0 %v5107_v3 }
 0x436   : > { %4596 = vmatmul.mubr.f32.vlgmr.msra.gmra.mrb[24].mxu0 %v6032_v10 }
 0x437   : > { %4598 = vmatprep.mubr.f32.mxu0 %v6037_v11  ;;  %5110 = vmatpush3.bf16.msra.mxu0 %v5107_v3 }
 0x43a   : > { %4599 = vmatmul.mubr.f32.gmra.mrb[26].mxu0 %v6044_v13 }
 0x43b   : > { %4601 = vmatprep.mubr.f32.mxu0 %v6049_v14 }
 0x43e   : > { %4602 = vmatmul.mubr.f32.gmra.mrb[28].mxu0 %v6056_v18 }
 0x43f   : > { %4604 = vmatprep.mubr.f32.mxu0 %v6061_v20 }
 0x442   : > { %4605 = vmatmul.mubr.f32.gmra.mrb[30].mxu0 %v6068_v21 }
 0x443   : > { %4607 = vmatprep.mubr.f32.mxu0 %v6073_v22 }
 0x446   : > { %4608 = vmatmul.mubr.f32.gmra.mrb[32].mxu0 %v6080_v24 }
 0x447   : > { %4610 = vmatprep.mubr.f32.mxu0 %v6085_v27 }
 0x44a   : > { %4611 = vmatmul.mubr.f32.gmra.mrb[34].mxu0 %v6092_v29 }
 0x44b   : > { %4613 = vmatprep.mubr.f32.mxu0 %v6097_v30 }
 0x44e   : > { %4614 = vmatmul.mubr.f32.gmra.mrb[36].mxu0 %v6104_v33 }
 0x44f   : > { %4616 = vmatprep.mubr.f32.mxu0 %v6109_v35 }
 0x452   : > { %4617 = vmatmul.mubr.f32.gmra.mrb[38].mxu0 %v6116_v36 }
 0x509   : > { %v4597_v5 = vpop.f32.mrb[24].mxu0 }
 0x50a   : > { %v1797_v10 = vpop.f32.mrb[25].mxu0  ;;  %v1879_v11 = vsel %vm532_vm0, %v4597_v5, 0.0 }
 0x50b   : > { %1880 = vadd.xlane.f32.xlu1 %v1879_v11  ;;  %v1876_v13 = vsel %vm532_vm0, %v1797_v10, 0.0 }
 0x50c   : > { %1877 = vadd.xlane.f32.xlu0 %v1876_v13 }
 0x50d   : > { %v4600_v14 = vpop.f32.mrb[26].mxu0 }
 0x50e   : > { %v1807_v18 = vpop.f32.mrb[27].mxu0  ;;  %v1885_v20 = vsel %vm532_vm0, %v4600_v14, 0.0 }
 0x50f   : > { %1886 = vadd.xlane.f32.xlu1 %v1885_v20  ;;  %v1882_v21 = vsel %vm532_vm0, %v1807_v18, 0.0 }
 0x510   : > { %1883 = vadd.xlane.f32.xlu0 %v1882_v21 }
 0x511   : > { %v4603_v22 = vpop.f32.mrb[28].mxu0 }
 0x512   : > { %v1817_v24 = vpop.f32.mrb[29].mxu0  ;;  %v1891_v27 = vsel %vm532_vm0, %v4603_v22, 0.0 }
 0x513   : > { %1892 = vadd.xlane.f32.xlu1 %v1891_v27  ;;  %v1888_v29 = vsel %vm532_vm0, %v1817_v24, 0.0 }
 0x514   : > { %1889 = vadd.xlane.f32.xlu0 %v1888_v29 }
 0x515   : > { %v4606_v30 = vpop.f32.mrb[30].mxu0 }
 0x516   : > { %v1827_v33 = vpop.f32.mrb[31].mxu0  ;;  %v1897_v35 = vsel %vm532_vm0, %v4606_v30, 0.0 }
 0x517   : > { %1898 = vadd.xlane.f32.xlu1 %v1897_v35  ;;  %v1894_v36 = vsel %vm532_vm0, %v1827_v33, 0.0 }
 0x518   : > { %1895 = vadd.xlane.f32.xlu0 %v1894_v36 }
 0x519   : > { %v4609_v16 = vpop.f32.mrb[32].mxu0 }
 0x51a   : > { %v1837_v17 = vpop.f32.mrb[33].mxu0  ;;  %v1903_v55 = vsel %vm532_vm0, %v4609_v16, 0.0 }
 0x51b   : > { %1904 = vadd.xlane.f32.xlu1 %v1903_v55  ;;  %v1900_v60 = vsel %vm532_vm0, %v1837_v17, 0.0 }
 0x51c   : > { %1901 = vadd.xlane.f32.xlu0 %v1900_v60 }
 0x51d   : > { %v4612_v58 = vpop.f32.mrb[34].mxu0 }
 0x51e   : > { %v1847_v25 = vpop.f32.mrb[35].mxu0  ;;  %v1909_v26 = vsel %vm532_vm0, %v4612_v58, 0.0 }
 0x51f   : > { %1910 = vadd.xlane.f32.xlu1 %v1909_v26  ;;  %v1906_v61 = vsel %vm532_vm0, %v1847_v25, 0.0 }
 0x520   : > { %1907 = vadd.xlane.f32.xlu0 %v1906_v61 }
 0x521   : > { %v4615_v62 = vpop.f32.mrb[36].mxu0 }
 0x522   : > { %v1857_v0 = vpop.f32.mrb[37].mxu0  ;;  %v1915_v32 = vsel %vm532_vm0, %v4615_v62, 0.0 }
 0x523   : > { %1916 = vadd.xlane.f32.xlu1 %v1915_v32  ;;  %v1912_v34 = vsel %vm532_vm0, %v1857_v0, 0.0 }
 0x524   : > { %1913 = vadd.xlane.f32.xlu0 %v1912_v34 }
 0x525   : > { %v4618_v1 = vpop.f32.mrb[38].mxu0 }
 0x526   : > { %v1867_v38 = vpop.f32.mrb[39].mxu0  ;;  %v1921_v43 = vsel %vm532_vm0, %v4618_v1, 0.0 }
 0x527   : > { %1922 = vadd.xlane.f32.xlu1 %v1921_v43  ;;  %v1918_v41 = vsel %vm532_vm0, %v1867_v38, 0.0 }
 0x528   : > { %1919 = vadd.xlane.f32.xlu0 %v1918_v41 }
 0x598   : > { %v1881_v42 = vpop.xlane.xlu1 %1880 }
 0x599   : > { %v1925_v45 = vadd.f32 1e-05, %v1881_v42  ;;  %v1878_v46 = vpop.xlane.xlu0 %1877 }
 0x59a   : > { %v1924_v47 = vadd.f32 1e-05, %v1878_v46 }
 0x59b   : > { %5502 = vrsqrt.f32 %v1925_v45 }
 0x59c   : > { %5504 = vrsqrt.f32 %v1924_v47  ;;  %v1887_v50 = vpop.xlane.xlu1 %1886 }
 0x59d   : > { %v1927_v51 = vadd.f32 1e-05, %v1887_v50  ;;  %v1884_v7 = vpop.xlane.xlu0 %1883 }
 0x59e   : > { %v1926_v6 = vadd.f32 1e-05, %v1884_v7 }
 0x59f   : > { %5506 = vrsqrt.f32 %v1927_v51 }
 0x5a0   : > { %5508 = vrsqrt.f32 %v1926_v6  ;;  %v1893_v9 = vpop.xlane.xlu1 %1892 }
 0x5a1   : > { %v1929_v57 = vadd.f32 1e-05, %v1893_v9  ;;  %v1890_v59 = vpop.xlane.xlu0 %1889 }
 0x5a2   : > { %v1928_v52 = vadd.f32 1e-05, %v1890_v59 }
 0x5a3   : > { %5510 = vrsqrt.f32 %v1929_v57 }
 0x5a4   : > { %5512 = vrsqrt.f32 %v1928_v52  ;;  %v1899_v54 = vpop.xlane.xlu1 %1898 }
 0x5a5   : > { %v5503_v63 = vpop.eup %5502  ;;  %v1931_v2 = vadd.f32 1e-05, %v1899_v54  ;;  %v1896_v3 = vpop.xlane.xlu0 %1895 }
 0x5a6   : > { %v5505_v5 = vpop.eup %5504  ;;  %v1930_v10 = vadd.f32 1e-05, %v1896_v3  ;;  %v1957_v13 = vmul.f32 %v5503_v63, %v6138_v8 }
 0x5a7   : > { %5514 = vrsqrt.f32 %v1931_v2  ;;  %v1956_v11 = vmul.f32 %v5505_v5, %v6142_v39 }
 0x5a8   : > { %5516 = vrsqrt.f32 %v1930_v10  ;;  %v1905_v14 = vpop.xlane.xlu1 %1904 }
 0x5a9   : > { %v5507_v18 = vpop.eup %5506  ;;  %v1933_v20 = vadd.f32 1e-05, %v1905_v14  ;;  %4623 = vmatprep.mubr.msk.f32.mxu0 %vm532_vm0, %v1956_v11  ;;  %v1902_v21 = vpop.xlane.xlu0 %1901 }
 0x5aa   : > { %v5509_v22 = vpop.eup %5508  ;;  %v1932_v24 = vadd.f32 1e-05, %v1902_v21  ;;  %4624 = vmatmul.mubr.msk.f32.vlgmr.msra.gmra.mrb[40].mxu0 %vm532_vm0, %v1957_v13  ;;  %v1959_v39 = vmul.f32 %v5507_v18, %v6150_v49 }
 0x5ab   : > { %5518 = vrsqrt.f32 %v1933_v20  ;;  %v1958_v27 = vmul.f32 %v5509_v22, %v6154_v4 }
 0x5ac   : > { %5520 = vrsqrt.f32 %v1932_v24  ;;  %v1911_v29 = vpop.xlane.xlu1 %1910 }
 0x5ad   : > { %v5511_v30 = vpop.eup %5510  ;;  %v1935_v8 = vadd.f32 1e-05, %v1911_v29  ;;  %4626 = vmatprep.mubr.msk.f32.mxu0 %vm532_vm0, %v1958_v27  ;;  %v1908_v33 = vpop.xlane.xlu0 %1907 }
 0x5ae   : > { %v5513_v35 = vpop.eup %5512  ;;  %v1934_v36 = vadd.f32 1e-05, %v1908_v33  ;;  %4627 = vmatmul.mubr.msk.f32.gmra.mrb[42].mxu0 %vm532_vm0, %v1959_v39  ;;  %v1961_v4 = vmul.f32 %v5511_v30, %v6162_v12  ;;  %v2179_v39 = vld [vmem:[%s6942_s8] sm:$0xff] }
 0x5af   : > { %5522 = vrsqrt.f32 %v1935_v8  ;;  %v1960_v16 = vmul.f32 %v5513_v35, %v6166_v15  ;;  %4679 = vmatprep.mubr.f32.mxu1 %v2179_v39 }
 0x5b0   : > { %5524 = vrsqrt.f32 %v1934_v36  ;;  %v1917_v17 = vpop.xlane.xlu1 %1916  ;;  %v2702_v36 = vld [vmem:[%s6945_s11] sm:$0xff] }
 0x5b1   : > { %v5515_v55 = vpop.eup %5514  ;;  %v1937_v60 = vadd.f32 1e-05, %v1917_v17  ;;  %4629 = vmatprep.mubr.msk.f32.mxu0 %vm532_vm0, %v1960_v16  ;;  %v1914_v49 = vpop.xlane.xlu0 %1913  ;;  %v2704_v16 = vld [vmem:[%s6945_s11 + $0x10] sm:$0xff]  ;;  %v2703_v17 = vld [vmem:[%s6945_s11 + $0x8] sm:$0xff] }
 0x5b2   : > { %v5517_v58 = vpop.eup %5516  ;;  %v1936_v25 = vadd.f32 1e-05, %v1914_v49  ;;  %4630 = vmatmul.mubr.msk.f32.gmra.mrb[44].mxu0 %vm532_vm0, %v1961_v4  ;;  %v1963_v15 = vmul.f32 %v5515_v55, %v6174_v19  ;;  %v2706_v4 = vld [vmem:[%s6945_s11 + $0x20] sm:$0xff]  ;;  %v2705_v55 = vld [vmem:[%s6945_s11 + $0x18] sm:$0xff]  ;;  %v2707_v49 = vld [vmem:[%s6945_s11 + $0x28] sm:$0xff] }
 0x5b3   : > { %5526 = vrsqrt.f32 %v1937_v60  ;;  %v1962_v26 = vmul.f32 %v5517_v58, %v6178_v23  ;;  %v2708_v60 = vld [vmem:[%s6945_s11 + $0x30] sm:$0xff]  ;;  %v2710_v58 = vld [vmem:[%s6945_s11 + $0x40] sm:$0xff] }
 0x5b4   : > { %5528 = vrsqrt.f32 %v1936_v25  ;;  %v1923_v61 = vpop.xlane.xlu1 %1922  ;;  %v2709_v25 = vld [vmem:[%s6945_s11 + $0x38] sm:$0xff] }
 0x5b5   : > { %v5519_v62 = vpop.eup %5518  ;;  %v1939_v0 = vadd.f32 1e-05, %v1923_v61  ;;  %4632 = vmatprep.mubr.msk.f32.mxu0 %vm532_vm0, %v1962_v26  ;;  %v1920_v12 = vpop.xlane.xlu0 %1919  ;;  %v2712_v26 = vld [vmem:[%s6945_s11 + $0x50] sm:$0xff]  ;;  %v2711_v61 = vld [vmem:[%s6945_s11 + $0x48] sm:$0xff] }
 0x5b6   : > { %v5521_v32 = vpop.eup %5520  ;;  %v1938_v34 = vadd.f32 1e-05, %v1920_v12  ;;  %4633 = vmatmul.mubr.msk.f32.gmra.mrb[46].mxu0 %vm532_vm0, %v1963_v15  ;;  %v1965_v38 = vmul.f32 %v5519_v62, %v6186_v28  ;;  %v2713_v15 = vld [vmem:[%s6945_s11 + $0x58] sm:$0xff] }
 0x5b7   : > { %5530 = vrsqrt.f32 %v1939_v0  ;;  %v1964_v1 = vmul.f32 %v5521_v32, %v6190_v31 }
 0x5b8   : > { %5532 = vrsqrt.f32 %v1938_v34 }
 0x5b9   : > { %v5523_v23 = vpop.eup %5522  ;;  %4635 = vmatprep.mubr.msk.f32.mxu0 %vm532_vm0, %v1964_v1 }
 0x5ba   : > { %v5525_v43 = vpop.eup %5524  ;;  %4636 = vmatmul.mubr.msk.f32.gmra.mrb[48].mxu0 %vm532_vm0, %v1965_v38  ;;  %v1967_v41 = vmul.f32 %v5523_v23, %v6198_v37 }
 0x5bb   : > { %v1966_v19 = vmul.f32 %v5525_v43, %v6202_v40 }
 0x5bd   : > { %v5527_v42 = vpop.eup %5526  ;;  %4638 = vmatprep.mubr.msk.f32.mxu0 %vm532_vm0, %v1966_v19 }
 0x5be   : > { %v5529_v45 = vpop.eup %5528  ;;  %4639 = vmatmul.mubr.msk.f32.gmra.mrb[50].mxu0 %vm532_vm0, %v1967_v41  ;;  %v1969_v28 = vmul.f32 %v5527_v42, %v6210_v44 }
 0x5bf   : > { %v1968_v31 = vmul.f32 %v5529_v45, %v6214_v48 }
 0x5c1   : > { %v5531_v46 = vpop.eup %5530  ;;  %4641 = vmatprep.mubr.msk.f32.mxu0 %vm532_vm0, %v1968_v31 }
 0x5c2   : > { %v5533_v47 = vpop.eup %5532  ;;  %4642 = vmatmul.mubr.msk.f32.gmra.mrb[52].mxu0 %vm532_vm0, %v1969_v28  ;;  %v1971_v37 = vmul.f32 %v5531_v46, %v6222_v53 }
 0x5c3   : > { %v1970_v40 = vmul.f32 %v5533_v47, %v6226_v56 }
 0x5c5   : > { %4644 = vmatprep.mubr.msk.f32.mxu0 %vm532_vm0, %v1970_v40 }
 0x5c6   : > { %4645 = vmatmul.mubr.msk.f32.gmra.mrb[54].mxu0 %vm532_vm0, %v1971_v37 }
 0x67d   : > { %v4625_v50 = vpop.f32.mrb[40].mxu0 }
 0x67e   : > { %v2088_v51 = vpop.f32.mrb[41].mxu0 }
 0x67f   : > { %v5462_v7 = vpack.i.bf16 %v4625_v50, %v2088_v51  ;;  %v6301_v48 = vpack.c.bf16 %v4625_v50, %v2088_v51 }
 0x681   : > { %v4628_v44 = vpop.f32.mrb[42].mxu0  ;;  %5423 = vrot.lane.b32.xlu0 %v5462_v7, %s5567_s20 }
 0x682   : > { %v2098_v6 = vpop.f32.mrb[43].mxu0 }
 0x683   : > { %v5467_v9 = vpack.i.bf16 %v4628_v44, %v2098_v6  ;;  %v6304_v57 = vpack.c.bf16 %v4628_v44, %v2098_v6 }
 0x685   : > { %5428 = vrot.lane.b32.xlu1 %v5467_v9, %s5567_s20  ;;  %v4631_v56 = vpop.f32.mrb[44].mxu0 }
 0x686   : > { %v2108_v53 = vpop.f32.mrb[45].mxu0 }
 0x687   : > { %v5472_v59 = vpack.i.bf16 %v4631_v56, %v2108_v53  ;;  %v6307_v52 = vpack.c.bf16 %v4631_v56, %v2108_v53 }
 0x689   : > { %5433 = vrot.lane.b32.xlu1 %v5472_v59, %s5567_s20  ;;  %v4634_v54 = vpop.f32.mrb[46].mxu0 }
 0x68a   : > { %v2118_v63 = vpop.f32.mrb[47].mxu0 }
 0x68b   : > { %v5477_v2 = vpack.i.bf16 %v4634_v54, %v2118_v63  ;;  %v6310_v3 = vpack.c.bf16 %v4634_v54, %v2118_v63 }
 0x68d   : > { %v4637_v5 = vpop.f32.mrb[48].mxu0  ;;  %5438 = vrot.lane.b32.xlu0 %v5477_v2, %s5567_s20 }
 0x68e   : > { %v2128_v10 = vpop.f32.mrb[49].mxu0 }
 0x68f   : > { %v5482_v11 = vpack.i.bf16 %v4637_v5, %v2128_v10  ;;  %v6313_v13 = vpack.c.bf16 %v4637_v5, %v2128_v10  ;;  %v2180_v10 = vld [vmem:[%s6942_s8 + $0x8] sm:$0xff] }
 0x691   : > { %5443 = vrot.lane.b32.xlu1 %v5482_v11, %s5567_s20  ;;  %v4640_v14 = vpop.f32.mrb[50].mxu0 }
 0x692   : > { %v2138_v18 = vpop.f32.mrb[51].mxu0 }
 0x693   : > { %v5487_v20 = vpack.i.bf16 %v4640_v14, %v2138_v18  ;;  %v6316_v21 = vpack.c.bf16 %v4640_v14, %v2138_v18  ;;  %v2182_v14 = vld [vmem:[%s6942_s8 + $0x18] sm:$0xff]  ;;  %v2183_v18 = vld [vmem:[%s6942_s8 + $0x20] sm:$0xff] }
 0x695   : > { %v4643_v22 = vpop.f32.mrb[52].mxu0  ;;  %5448 = vrot.lane.b32.xlu0 %v5487_v20, %s5567_s20 }
 0x696   : > { %v2148_v24 = vpop.f32.mrb[53].mxu0 }
 0x697   : > { %v5492_v27 = vpack.i.bf16 %v4643_v22, %v2148_v24  ;;  %v6319_v29 = vpack.c.bf16 %v4643_v22, %v2148_v24  ;;  %v2186_v22 = vld [vmem:[%s6942_s8 + $0x38] sm:$0xff]  ;;  %v2188_v24 = vld [vmem:[%s6942_s8 + $0x48] sm:$0xff] }
 0x699   : > { %5453 = vrot.lane.b32.xlu1 %v5492_v27, %s5567_s20  ;;  %v4646_v30 = vpop.f32.mrb[54].mxu0 }
 0x69a   : > { %v2158_v8 = vpop.f32.mrb[55].mxu0 }
 0x69b   : > { %v5497_v33 = vpack.i.bf16 %v4646_v30, %v2158_v8  ;;  %v6325_v35 = vpack.c.bf16 %v4646_v30, %v2158_v8 }
 0x69d   : > { %5463 = vrot.lane.b32.xlu1 %v5462_v7, %s5569_s0  ;;  %5458 = vrot.lane.b32.xlu0 %v5497_v33, %s5567_s20 }
 0x6a1   : > { %5473 = vrot.lane.b32.xlu1 %v5472_v59, %s5569_s0  ;;  %5468 = vrot.lane.b32.xlu0 %v5467_v9, %s5569_s0 }
 0x6a5   : > { %5483 = vrot.lane.b32.xlu1 %v5482_v11, %s5569_s0  ;;  %5478 = vrot.lane.b32.xlu0 %v5477_v2, %s5569_s0  ;;  %v2181_v11 = vld [vmem:[%s6942_s8 + $0x10] sm:$0xff] }
 0x6a9   : > { %5493 = vrot.lane.b32.xlu1 %v5492_v27, %s5569_s0  ;;  %5488 = vrot.lane.b32.xlu0 %v5487_v20, %s5569_s0  ;;  %v2184_v20 = vld [vmem:[%s6942_s8 + $0x28] sm:$0xff]  ;;  %v2190_v27 = vld [vmem:[%s6942_s8 + $0x58] sm:$0xff] }
 0x6ad   : > { %2716 = vperm.xlu1 %5421, %v2702_v36   ;;  %5498 = vrot.lane.b32.xlu0 %v5497_v33, %s5569_s0 }
 0x6b1   : > { %2726 = vperm.xlu1 %5421, %v2704_v16   ;;  %2721 = vperm.xlu0 %5420, %v2703_v17  }
 0x6b5   : > { %2736 = vperm.xlu1 %5421, %v2706_v4   ;;  %2731 = vperm.xlu0 %5420, %v2705_v55   ;;  %v2169_v4 = vld [vmem:[%s6941_s7 + $0x10] sm:$0xff] }
 0x6b9   : > { %2746 = vperm.xlu1 %5421, %v2708_v60   ;;  %2741 = vperm.xlu0 %5420, %v2707_v49  }
 0x6bd   : > { %2756 = vperm.xlu1 %5421, %v2710_v58   ;;  %2751 = vperm.xlu0 %5420, %v2709_v25   ;;  %v2171_v58 = vld [vmem:[%s6941_s7 + $0x20] sm:$0xff] }
 0x6c1   : > { %2766 = vperm.xlu1 %5421, %v2712_v26   ;;  %2761 = vperm.xlu0 %5420, %v2711_v61  }
 0x6c5   : > { %2771 = vperm.xlu0 %5420, %v2713_v15  }
 0x6f3   : > { %v5424_v62 = vpop.permute.xlu0 %5423 }
 0x6f4   : > { %v5426_v0 = vunpack.i.h.bf16 %v5424_v62  ;;  %v5425_v12 = vunpack.i.l.bf16 %v5424_v62  ;;  %v2172_v62 = vld [vmem:[%s6941_s7 + $0x28] sm:$0xff] }
 0x6f6   : > { %v5111_v32 = vpack.c.bf16 %v5426_v0, %v5425_v12  ;;  %v2173_v0 = vld [vmem:[%s6941_s7 + $0x30] sm:$0xff] }
 0x6f7   : > { %v5429_v34 = vpop.permute.xlu1 %5428 }
 0x6f8   : > { %v5431_v1 = vunpack.i.h.bf16 %v5429_v34  ;;  %v5430_v38 = vunpack.i.l.bf16 %v5429_v34  ;;  %5112 = vmatprep.subr.bf16.mxu1 %v5111_v32 }
 0x6f9   : > { %5114 = vmatpush3.bf16.msra.mxu1 %v5111_v32 }
 0x6fa   : > { %v5115_v23 = vpack.c.bf16 %v5431_v1, %v5430_v38  ;;  %v2174_v38 = vld [vmem:[%s6941_s7 + $0x38] sm:$0xff] }
 0x6fb   : > { %v5434_v43 = vpop.permute.xlu1 %5433 }
 0x6fc   : > { %v5436_v19 = vunpack.i.h.bf16 %v5434_v43  ;;  %v5435_v41 = vunpack.i.l.bf16 %v5434_v43  ;;  %5116 = vmatprep.subr.bf16.mxu1 %v5115_v23 }
 0x6fd   : > { %5118 = vmatpush3.bf16.msra.mxu1 %v5115_v23  ;;  %v2175_v23 = vld [vmem:[%s6941_s7 + $0x40] sm:$0xff] }
 0x6fe   : > { %v5119_v42 = vpack.c.bf16 %v5436_v19, %v5435_v41 }
 0x6ff   : > { %v5439_v45 = vpop.permute.xlu0 %5438 }
 0x700   : > { %v5441_v31 = vunpack.i.h.bf16 %v5439_v45  ;;  %v5440_v28 = vunpack.i.l.bf16 %v5439_v45  ;;  %5120 = vmatprep.subr.bf16.mxu1 %v5119_v42  ;;  %v2176_v45 = vld [vmem:[%s6941_s7 + $0x48] sm:$0xff] }
 0x701   : > { %5122 = vmatpush3.bf16.msra.mxu1 %v5119_v42 }
 0x702   : > { %v5123_v46 = vpack.c.bf16 %v5441_v31, %v5440_v28  ;;  %v2177_v31 = vld [vmem:[%s6941_s7 + $0x50] sm:$0xff] }
 0x703   : > { %v5444_v47 = vpop.permute.xlu1 %5443 }
 0x704   : > { %v5446_v40 = vunpack.i.h.bf16 %v5444_v47  ;;  %v5445_v37 = vunpack.i.l.bf16 %v5444_v47  ;;  %5124 = vmatprep.subr.bf16.mxu1 %v5123_v46 }
 0x705   : > { %5126 = vmatpush3.bf16.msra.mxu1 %v5123_v46 }
 0x706   : > { %v5127_v50 = vpack.c.bf16 %v5446_v40, %v5445_v37  ;;  %v2178_v37 = vld [vmem:[%s6941_s7 + $0x58] sm:$0xff] }
 0x707   : > { %v5449_v51 = vpop.permute.xlu0 %5448 }
 0x708   : > { %v5451_v7 = vunpack.i.h.bf16 %v5449_v51  ;;  %v5450_v44 = vunpack.i.l.bf16 %v5449_v51  ;;  %5128 = vmatprep.subr.bf16.mxu1 %v5127_v50 }
 0x709   : > { %5130 = vmatpush3.bf16.msra.mxu1 %v5127_v50  ;;  %v2505_v50 = vld [vmem:[%s6943_s9] sm:$0xff] }
 0x70a   : > { %v5131_v6 = vpack.c.bf16 %v5451_v7, %v5450_v44 }
 0x70b   : > { %v5454_v9 = vpop.permute.xlu1 %5453 }
 0x70c   : > { %v5456_v56 = vunpack.i.h.bf16 %v5454_v9  ;;  %v5455_v53 = vunpack.i.l.bf16 %v5454_v9  ;;  %5132 = vmatprep.subr.bf16.mxu1 %v5131_v6  ;;  %v2506_v9 = vld [vmem:[%s6943_s9 + $0x8] sm:$0xff] }
 0x70d   : > { %5134 = vmatpush3.bf16.msra.mxu1 %v5131_v6 }
 0x70e   : > { %v5135_v59 = vpack.c.bf16 %v5456_v56, %v5455_v53  ;;  %v2507_v56 = vld [vmem:[%s6943_s9 + $0x10] sm:$0xff]  ;;  %v2508_v53 = vld [vmem:[%s6943_s9 + $0x18] sm:$0xff] }
 0x70f   : > { %v5459_v54 = vpop.permute.xlu0 %5458  ;;  %v5464_v39 = vpop.permute.xlu1 %5463 }
 0x710   : > { %v5461_v63 = vunpack.i.h.bf16 %v5459_v54  ;;  %v5460_v2 = vunpack.i.l.bf16 %v5459_v54  ;;  %5136 = vmatprep.subr.bf16.mxu1 %v5135_v59  ;;  %v5466_v30 = vunpack.i.h.bf16 %v5464_v39  ;;  %v2510_v54 = vld [vmem:[%s6943_s9 + $0x28] sm:$0xff] }
 0x711   : > { %5138 = vmatpush3.bf16.msra.mxu1 %v5135_v59  ;;  %v2509_v59 = vld [vmem:[%s6943_s9 + $0x20] sm:$0xff] }
 0x712   : > { %v5139_v5 = vpack.c.bf16 %v5461_v63, %v5460_v2  ;;  %v2511_v63 = vld [vmem:[%s6943_s9 + $0x30] sm:$0xff]  ;;  %v2512_v2 = vld [vmem:[%s6943_s9 + $0x38] sm:$0xff] }
 0x713   : > { %v5469_v8 = vpop.permute.xlu0 %5468  ;;  %v5474_v17 = vpop.permute.xlu1 %5473 }
 0x714   : > { %5140 = vmatprep.subr.bf16.mxu1 %v5139_v5  ;;  %v5471_v36 = vunpack.i.h.bf16 %v5469_v8  ;;  %v5470_v16 = vunpack.i.l.bf16 %v5469_v8  ;;  %v5476_v55 = vunpack.i.h.bf16 %v5474_v17  ;;  %v5475_v60 = vunpack.i.l.bf16 %v5474_v17 }
 0x715   : > { %5142 = vmatpush3.bf16.msra.mxu1 %v5139_v5  ;;  %v2513_v5 = vld [vmem:[%s6943_s9 + $0x40] sm:$0xff] }
 0x716   : > { %5144 = vmatprep.subr.bf16.mxu1 %v6301_v48  ;;  %v5183_v25 = vpack.c.bf16 %v5476_v55, %v5475_v60 }
 0x717   : > { %v5479_v49 = vpop.permute.xlu0 %5478  ;;  %v5484_v15 = vpop.permute.xlu1 %5483 }
 0x718   : > { %4680 = vmatmul.mubr.f32.vlgmr.msra.gmra.mrb[16].mxu1 %v2180_v10  ;;  %v5481_v26 = vunpack.i.h.bf16 %v5479_v49  ;;  %v5480_v61 = vunpack.i.l.bf16 %v5479_v49  ;;  %v5486_v12 = vunpack.i.h.bf16 %v5484_v15  ;;  %v5485_v32 = vunpack.i.l.bf16 %v5484_v15  ;;  %v2514_v10 = vld [vmem:[%s6943_s9 + $0x48] sm:$0xff] }
 0x719   : > { %5146 = vmatpush3.bf16.msra.mxu1 %v6301_v48  ;;  %4682 = vmatprep.mubr.f32.mxu1 %v2181_v11  ;;  %v2185_v48 = vld [vmem:[%s6942_s8 + $0x30] sm:$0xff] }
 0x71a   : > { %5148 = vmatprep.subr.bf16.mxu1 %v6304_v57  ;;  %v5187_v34 = vpack.c.bf16 %v5481_v26, %v5480_v61  ;;  %v5191_v43 = vpack.c.bf16 %v5486_v12, %v5485_v32  ;;  %v2515_v11 = vld [vmem:[%s6943_s9 + $0x50] sm:$0xff] }
 0x71b   : > { %v5489_v1 = vpop.permute.xlu0 %5488  ;;  %v5494_v42 = vpop.permute.xlu1 %5493 }
 0x71c   : > { %4683 = vmatmul.mubr.f32.gmra.mrb[18].mxu1 %v2182_v14  ;;  %v5491_v19 = vunpack.i.h.bf16 %v5489_v1  ;;  %v5490_v41 = vunpack.i.l.bf16 %v5489_v1  ;;  %v5496_v28 = vunpack.i.h.bf16 %v5494_v42  ;;  %v5495_v46 = vunpack.i.l.bf16 %v5494_v42  ;;  %v2516_v14 = vld [vmem:[%s6943_s9 + $0x58] sm:$0xff] }
 0x71d   : > { %5150 = vmatpush3.bf16.msra.mxu1 %v6304_v57  ;;  %4685 = vmatprep.mubr.f32.mxu1 %v2183_v18  ;;  %v2187_v57 = vld [vmem:[%s6942_s8 + $0x40] sm:$0xff] }
 0x71e   : > { %5152 = vmatprep.subr.bf16.mxu1 %v6307_v52  ;;  %v5195_v47 = vpack.c.bf16 %v5491_v19, %v5490_v41  ;;  %v5199_v51 = vpack.c.bf16 %v5496_v28, %v5495_v46  ;;  %v6496_v18 = vld [vmem:[%s6946_s12] sm:$0xff] }
 0x71f   : > { %v5499_v40 = vpop.permute.xlu0 %5498  ;;  %4821 = vmatprep.mubr.msk.f32.mxu0 %vm2810_vm2, %v6496_v18 }
 0x720   : > { %4686 = vmatmul.mubr.f32.gmra.mrb[20].mxu1 %v2184_v20  ;;  %v5501_v7 = vunpack.i.h.bf16 %v5499_v40  ;;  %v5500_v44 = vunpack.i.l.bf16 %v5499_v40 }
 0x721   : > { %5154 = vmatpush3.bf16.msra.mxu1 %v6307_v52  ;;  %4688 = vmatprep.mubr.f32.mxu1 %v2185_v48  ;;  %v2189_v52 = vld [vmem:[%s6942_s8 + $0x50] sm:$0xff] }
 0x722   : > { %5156 = vmatprep.subr.bf16.mxu1 %v6310_v3  ;;  %v5203_v6 = vpack.c.bf16 %v5501_v7, %v5500_v44 }
 0x724   : > { %4689 = vmatmul.mubr.f32.gmra.mrb[22].mxu1 %v2186_v22 }
 0x725   : > { %5158 = vmatpush3.bf16.msra.mxu1 %v6310_v3  ;;  %4691 = vmatprep.mubr.f32.mxu1 %v2187_v57  ;;  %v2167_v3 = vld [vmem:[%s6941_s7] sm:$0xff] }
 0x726   : > { %5160 = vmatprep.subr.bf16.mxu1 %v6313_v13 }
 0x728   : > { %4692 = vmatmul.mubr.f32.gmra.mrb[24].mxu1 %v2188_v24 }
 0x729   : > { %5162 = vmatpush3.bf16.msra.mxu1 %v6313_v13  ;;  %4694 = vmatprep.mubr.f32.mxu1 %v2189_v52  ;;  %v5465_v13 = vunpack.i.l.bf16 %v5464_v39 }
 0x72a   : > { %5164 = vmatprep.subr.bf16.mxu1 %v6316_v21 }
 0x72b   : > { %v5175_v33 = vpack.c.bf16 %v5466_v30, %v5465_v13 }
 0x72c   : > { %4695 = vmatmul.mubr.f32.gmra.mrb[26].mxu1 %v2190_v27  ;;  %v2717_v48 = vpop.permute.xlu1 %2716 }
 0x72d   : > { %5166 = vmatpush3.bf16.msra.mxu1 %v6316_v21  ;;  %4729 = vmatprep.mubr.f32.mxu1 %v2167_v3  ;;  %v2168_v21 = vld [vmem:[%s6941_s7 + $0x8] sm:$0xff] }
 0x72e   : > { %5168 = vmatprep.subr.bf16.mxu1 %v6319_v29 }
 0x730   : > { %v2722_v20 = vpop.permute.xlu0 %2721  ;;  %v2727_v57 = vpop.permute.xlu1 %2726 }
 0x731   : > { %5170 = vmatpush3.bf16.msra.mxu1 %v6319_v29  ;;  %v5179_v29 = vpack.c.bf16 %v5471_v36, %v5470_v16 }
 0x732   : > { %5172 = vmatprep.subr.bf16.mxu1 %v6325_v35 }
 0x734   : > { %v2732_v22 = vpop.permute.xlu0 %2731  ;;  %v2737_v30 = vpop.permute.xlu1 %2736 }
 0x735   : > { %5174 = vmatpush3.bf16.msra.mxu1 %v6325_v35  ;;  %v2170_v35 = vld [vmem:[%s6941_s7 + $0x18] sm:$0xff] }
 0x736   : > { %5176 = vmatprep.subr.bf16.mxu1 %v5175_v33 }
 0x738   : > { %4730 = vmatmul.mubr.f32.vlgmr.msra.gmra.mrb[16].mxu1 %v2168_v21  ;;  %v2742_v3 = vpop.permute.xlu0 %2741  ;;  %v2747_v49 = vpop.permute.xlu1 %2746 }
 0x739   : > { %5178 = vmatpush3.bf16.msra.mxu1 %v5175_v33  ;;  %4732 = vmatprep.mubr.f32.mxu1 %v2169_v4 }
 0x73a   : > { %5180 = vmatprep.subr.bf16.mxu1 %v5179_v29 }
 0x73c   : > { %4733 = vmatmul.mubr.f32.gmra.mrb[18].mxu1 %v2170_v35  ;;  %v2752_v55 = vpop.permute.xlu0 %2751 }
 0x73d   : > { %5182 = vmatpush3.bf16.msra.mxu1 %v5179_v29  ;;  %4735 = vmatprep.mubr.f32.mxu1 %v2171_v58 }
 0x73e   : > { %5184 = vmatprep.subr.bf16.mxu1 %v5183_v25 }
 0x740   : > { %4736 = vmatmul.mubr.f32.gmra.mrb[20].mxu1 %v2172_v62  ;;  %v2762_v32 = vpop.permute.xlu0 %2761 }
 0x741   : > { %5186 = vmatpush3.bf16.msra.mxu1 %v5183_v25  ;;  %4738 = vmatprep.mubr.f32.mxu1 %v2173_v0 }
 0x742   : > { %5188 = vmatprep.subr.bf16.mxu1 %v5187_v34 }
 0x744   : > { %4739 = vmatmul.mubr.f32.gmra.mrb[22].mxu1 %v2174_v38  ;;  %v2757_v38 = vpop.permute.xlu1 %2756  ;;  %v2772_v46 = vpop.permute.xlu0 %2771 }
 0x745   : > { %5190 = vmatpush3.bf16.msra.mxu1 %v5187_v34  ;;  %4741 = vmatprep.mubr.f32.mxu1 %v2175_v23 }
 0x746   : > { %5192 = vmatprep.subr.bf16.mxu1 %v5191_v43 }
 0x748   : > { %4742 = vmatmul.mubr.f32.gmra.mrb[24].mxu1 %v2176_v45 }
 0x749   : > { %5194 = vmatpush3.bf16.msra.mxu1 %v5191_v43  ;;  %4744 = vmatprep.mubr.f32.mxu1 %v2177_v31 }
 0x74a   : > { %5196 = vmatprep.subr.bf16.mxu1 %v5195_v47 }
 0x74c   : > { %4745 = vmatmul.mubr.f32.gmra.mrb[26].mxu1 %v2178_v37  ;;  %v2767_v37 = vpop.permute.xlu1 %2766 }
 0x74d   : > { %5198 = vmatpush3.bf16.msra.mxu1 %v5195_v47  ;;  %4779 = vmatprep.mubr.f32.mxu1 %v2505_v50 }
 0x74e   : > { %5200 = vmatprep.subr.bf16.mxu1 %v5199_v51 }
 0x751   : > { %5202 = vmatpush3.bf16.msra.mxu1 %v5199_v51 }
 0x752   : > { %5204 = vmatprep.subr.bf16.mxu1 %v5203_v6 }
 0x755   : > { %5206 = vmatpush3.bf16.msra.mxu1 %v5203_v6 }
 0x758   : > { %4780 = vmatmul.mubr.f32.vlgmr.msra.gmra.mrb[16].mxu1 %v2506_v9 }
 0x759   : > { %4782 = vmatprep.mubr.f32.mxu1 %v2507_v56 }
 0x75c   : > { %4783 = vmatmul.mubr.f32.gmra.mrb[18].mxu1 %v2508_v53  ;;  %v6563_v53 = vld [vmem:[%s6946_s12 + $0x8] sm:$0xff] }
 0x75d   : > { %4785 = vmatprep.mubr.f32.mxu1 %v2509_v59  ;;  %v6568_v59 = vld [vmem:[%s6946_s12 + $0x10] sm:$0xff] }
 0x760   : > { %4786 = vmatmul.mubr.f32.gmra.mrb[20].mxu1 %v2510_v54  ;;  %v6577_v54 = vld [vmem:[%s6946_s12 + $0x18] sm:$0xff] }
 0x761   : > { %4788 = vmatprep.mubr.f32.mxu1 %v2511_v63  ;;  %v6582_v63 = vld [vmem:[%s6946_s12 + $0x20] sm:$0xff] }
 0x764   : > { %4789 = vmatmul.mubr.f32.gmra.mrb[22].mxu1 %v2512_v2  ;;  %v6591_v2 = vld [vmem:[%s6946_s12 + $0x28] sm:$0xff] }
 0x765   : > { %4791 = vmatprep.mubr.f32.mxu1 %v2513_v5  ;;  %v6596_v5 = vld [vmem:[%s6946_s12 + $0x30] sm:$0xff] }
 0x768   : > { %4792 = vmatmul.mubr.f32.gmra.mrb[24].mxu1 %v2514_v10  ;;  %v6605_v10 = vld [vmem:[%s6946_s12 + $0x38] sm:$0xff] }
 0x769   : > { %4794 = vmatprep.mubr.f32.mxu1 %v2515_v11  ;;  %v6610_v11 = vld [vmem:[%s6946_s12 + $0x40] sm:$0xff] }
 0x76c   : > { %4795 = vmatmul.mubr.f32.gmra.mrb[26].mxu1 %v2516_v14  ;;  %v6619_v14 = vld [vmem:[%s6946_s12 + $0x48] sm:$0xff] }
 0x82b   : > { %v4781_v24 = vpop.f32.mrb[16].mxu1 }
 0x82c   : > { %v6500_v52 = vadd.f32 %v4781_v24, %v2722_v20  ;;  %v2631_v27 = vpop.f32.mrb[17].mxu1  ;;  %v6624_v20 = vld [vmem:[%s6946_s12 + $0x50] sm:$0xff] }
 0x82d   : > { %v6502_v39 = vadd.f32 %v2717_v48, %v2631_v27  ;;  %v6633_v48 = vld [vmem:[%s6946_s12 + $0x58] sm:$0xff] }
 0x82e   : > { %v2787_v13 = vmax.f32 %v6500_v52, 0.0 }
 0x82f   : > { %v2786_v8 = vmax.f32 %v6502_v39, 0.0  ;;  %v4784_v33 = vpop.f32.mrb[18].mxu1 }
 0x830   : > { %v6506_v36 = vadd.f32 %v4784_v33, %v2732_v22  ;;  %v2641_v16 = vpop.f32.mrb[19].mxu1 }
 0x831   : > { %v5207_v17 = vpack.c.bf16 %v2787_v13, %v2786_v8  ;;  %v6512_v21 = vadd.f32 %v2727_v57, %v2641_v16 }
 0x832   : > { %v2789_v4 = vmax.f32 %v6506_v36, 0.0 }
 0x833   : > { %v2788_v60 = vmax.f32 %v6512_v21, 0.0  ;;  %v4787_v29 = vpop.f32.mrb[20].mxu1  ;;  %5208 = vmatprep.subr.bf16.mxu0 %v5207_v17 }
 0x834   : > { %v6516_v35 = vadd.f32 %v4787_v29, %v2742_v3  ;;  %v2651_v58 = vpop.f32.mrb[21].mxu1  ;;  %5210 = vmatpush3.bf16.msra.mxu0 %v5207_v17 }
 0x835   : > { %v5211_v25 = vpack.c.bf16 %v2789_v4, %v2788_v60  ;;  %v6522_v26 = vadd.f32 %v2737_v30, %v2651_v58 }
 0x836   : > { %v2791_v61 = vmax.f32 %v6516_v35, 0.0 }
 0x837   : > { %v2790_v15 = vmax.f32 %v6522_v26, 0.0  ;;  %v4790_v62 = vpop.f32.mrb[22].mxu1  ;;  %5212 = vmatprep.subr.bf16.mxu0 %v5211_v25 }
 0x838   : > { %v6526_v0 = vadd.f32 %v4790_v62, %v2752_v55  ;;  %v2661_v12 = vpop.f32.mrb[23].mxu1  ;;  %5214 = vmatpush3.bf16.msra.mxu0 %v5211_v25 }
 0x839   : > { %v5215_v34 = vpack.c.bf16 %v2791_v61, %v2790_v15  ;;  %v6532_v1 = vadd.f32 %v2747_v49, %v2661_v12 }
 0x83a   : > { %v2793_v23 = vmax.f32 %v6526_v0, 0.0 }
 0x83b   : > { %v2792_v43 = vmax.f32 %v6532_v1, 0.0  ;;  %v4793_v19 = vpop.f32.mrb[24].mxu1  ;;  %5216 = vmatprep.subr.bf16.mxu0 %v5215_v34 }
 0x83c   : > { %v6536_v41 = vadd.f32 %v4793_v19, %v2762_v32  ;;  %v2671_v42 = vpop.f32.mrb[25].mxu1  ;;  %5218 = vmatpush3.bf16.msra.mxu0 %v5215_v34 }
 0x83d   : > { %v5219_v45 = vpack.c.bf16 %v2793_v23, %v2792_v43  ;;  %v6542_v31 = vadd.f32 %v2757_v38, %v2671_v42 }
 0x83e   : > { %v2795_v28 = vmax.f32 %v6536_v41, 0.0 }
 0x83f   : > { %v2794_v47 = vmax.f32 %v6542_v31, 0.0  ;;  %v4796_v40 = vpop.f32.mrb[26].mxu1  ;;  %5220 = vmatprep.subr.bf16.mxu0 %v5219_v45 }
 0x840   : > { %v6546_v50 = vadd.f32 %v4796_v40, %v2772_v46  ;;  %v2681_v51 = vpop.f32.mrb[27].mxu1  ;;  %5222 = vmatpush3.bf16.msra.mxu0 %v5219_v45 }
 0x841   : > { %v5223_v7 = vpack.c.bf16 %v2795_v28, %v2794_v47  ;;  %v6552_v44 = vadd.f32 %v2767_v37, %v2681_v51 }
 0x842   : > { %v2797_v6 = vmax.f32 %v6546_v50, 0.0 }
 0x843   : > { %v2796_v9 = vmax.f32 %v6552_v44, 0.0  ;;  %5224 = vmatprep.subr.bf16.mxu0 %v5223_v7 }
 0x844   : > { %5226 = vmatpush3.bf16.msra.mxu0 %v5223_v7 }
 0x845   : > { %v5227_v56 = vpack.c.bf16 %v2797_v6, %v2796_v9 }
 0x847   : > { %5228 = vmatprep.subr.bf16.mxu0 %v5227_v56 }
 0x848   : > { %5230 = vmatpush3.bf16.msra.mxu0 %v5227_v56 }
 0x84b   : > { %4822 = vmatmul.mubr.msk.f32.vlgmr.msra.gmra.mrb[56].mxu0 %vm2810_vm2, %v6563_v53 }
 0x84c   : > { %4824 = vmatprep.mubr.msk.f32.mxu0 %vm2810_vm2, %v6568_v59 }
 0x84f   : > { %4825 = vmatmul.mubr.msk.f32.gmra.mrb[58].mxu0 %vm2810_vm2, %v6577_v54 }
 0x850   : > { %4827 = vmatprep.mubr.msk.f32.mxu0 %vm2810_vm2, %v6582_v63 }
 0x853   : > { %4828 = vmatmul.mubr.msk.f32.gmra.mrb[60].mxu0 %vm2810_vm2, %v6591_v2 }
 0x854   : > { %4830 = vmatprep.mubr.msk.f32.mxu0 %vm2810_vm2, %v6596_v5 }
 0x857   : > { %4831 = vmatmul.mubr.msk.f32.gmra.mrb[62].mxu0 %vm2810_vm2, %v6605_v10 }
 0x858   : > { %4833 = vmatprep.mubr.msk.f32.mxu0 %vm2810_vm2, %v6610_v11 }
 0x85b   : > { %4834 = vmatmul.mubr.msk.f32.gmra.mrb[64].mxu0 %vm2810_vm2, %v6619_v14 }
 0x85c   : > { %4836 = vmatprep.mubr.msk.f32.mxu0 %vm2810_vm2, %v6624_v20 }
 0x85f   : > { %4837 = vmatmul.mubr.msk.f32.gmra.mrb[66].mxu0 %vm2810_vm2, %v6633_v48 }
 0x860   : > { %4863 = vmatprep.mubr.msk.f32.mxu0 %vm2810_vm2, %v6496_v18 }
 0x91e   : > { %v4823_v22 = vpop.f32.mrb[56].mxu0 }
 0x91f   : > { %v2913_v57 = vpop.f32.mrb[57].mxu0  ;;  %v2976_v24 = vsel %vm2972_vm3, %v4823_v22, 0.0 }
 0x920   : > { %2977 = vadd.xlane.f32.xlu0 %v2976_v24  ;;  %v2973_v27 = vsel %vm2972_vm3, %v2913_v57, 0.0 }
 0x921   : > { %2974 = vadd.xlane.f32.xlu1 %v2973_v27 }
 0x922   : > { %v4826_v3 = vpop.f32.mrb[58].mxu0 }
 0x923   : > { %v2923_v30 = vpop.f32.mrb[59].mxu0  ;;  %v2982_v33 = vsel %vm2972_vm3, %v4826_v3, 0.0 }
 0x924   : > { %v2979_v16 = vsel %vm2972_vm3, %v2923_v30, 0.0 }
 0x925   : > { %2983 = vadd.xlane.f32.xlu1 %v2982_v33  ;;  %2980 = vadd.xlane.f32.xlu0 %v2979_v16 }
 0x926   : > { %v4829_v17 = vpop.f32.mrb[60].mxu0 }
 0x927   : > { %v2933_v55 = vpop.f32.mrb[61].mxu0  ;;  %v2988_v18 = vsel %vm2972_vm3, %v4829_v17, 0.0 }
 0x928   : > { %v2985_v29 = vsel %vm2972_vm3, %v2933_v55, 0.0 }
 0x929   : > { %2989 = vadd.xlane.f32.xlu1 %v2988_v18  ;;  %2986 = vadd.xlane.f32.xlu0 %v2985_v29 }
 0x92a   : > { %v4832_v49 = vpop.f32.mrb[62].mxu0 }
 0x92b   : > { %v2943_v58 = vpop.f32.mrb[63].mxu0  ;;  %v2994_v25 = vsel %vm2972_vm3, %v4832_v49, 0.0 }
 0x92c   : > { %v2991_v62 = vsel %vm2972_vm3, %v2943_v58, 0.0 }
 0x92d   : > { %2995 = vadd.xlane.f32.xlu1 %v2994_v25  ;;  %2992 = vadd.xlane.f32.xlu0 %v2991_v62 }
 0x92e   : > { %v4835_v12 = vpop.f32.mrb[64].mxu0 }
 0x92f   : > { %v2953_v32 = vpop.f32.mrb[65].mxu0  ;;  %v3000_v34 = vsel %vm2972_vm3, %v4835_v12, 0.0 }
 0x930   : > { %v2997_v38 = vsel %vm2972_vm3, %v2953_v32, 0.0 }
 0x931   : > { %3001 = vadd.xlane.f32.xlu1 %v3000_v34  ;;  %2998 = vadd.xlane.f32.xlu0 %v2997_v38 }
 0x932   : > { %v4838_v19 = vpop.f32.mrb[66].mxu0 }
 0x933   : > { %v2963_v42 = vpop.f32.mrb[67].mxu0  ;;  %v3006_v45 = vsel %vm2972_vm3, %v4838_v19, 0.0 }
 0x934   : > { %v3003_v46 = vsel %vm2972_vm3, %v2963_v42, 0.0 }
 0x935   : > { %3007 = vadd.xlane.f32.xlu1 %v3006_v45  ;;  %3004 = vadd.xlane.f32.xlu0 %v3003_v46 }
 0x9ad   : > { %v2978_v40 = vpop.xlane.xlu0 %2977 }
 0x9ae   : > { %v6653_v37 = vsub.f32 %v2787_v13, %v2978_v40  ;;  %v2975_v51 = vpop.xlane.xlu1 %2974 }
 0x9af   : > { %v6657_v7 = vsub.f32 %v2786_v8, %v2975_v51 }
 0x9b0   : > { %v3022_v56 = vmul.f32 %v6653_v37, %v6653_v37 }
 0x9b1   : > { %v3021_v22 = vmul.f32 %v6657_v7, %v6657_v7 }
 0x9b2   : > { %v2984_v57 = vpop.xlane.xlu1 %2983  ;;  %v2981_v24 = vpop.xlane.xlu0 %2980 }
 0x9b3   : > { %v6665_v27 = vsub.f32 %v2789_v4, %v2984_v57  ;;  %v6669_v52 = vsub.f32 %v2788_v60, %v2981_v24  ;;  %v5231_v13 = vpack.c.bf16 %v3022_v56, %v3021_v22  ;;  %v3230_v56 = vld [vmem:[%s6947_s13] sm:$0xff]  ;;  %v3231_v22 = vld [vmem:[%s6947_s13 + $0x8] sm:$0xff]  ;;  %v3232_v24 = vld [vmem:[%s6947_s13 + $0x10] sm:$0xff] }
 0x9b4   : > { %v5255_v57 = vpack.c.bf16 %v3231_v22, %v3230_v56 }
 0x9b5   : > { %v3024_v39 = vmul.f32 %v6665_v27, %v6665_v27  ;;  %v3023_v8 = vmul.f32 %v6669_v52, %v6669_v52  ;;  %5232 = vmatprep.subr.bf16.mxu0 %v5231_v13 }
 0x9b6   : > { %5234 = vmatpush3.bf16.msra.mxu0 %v5231_v13  ;;  %v2990_v3 = vpop.xlane.xlu1 %2989  ;;  %v2987_v30 = vpop.xlane.xlu0 %2986  ;;  %v3233_v13 = vld [vmem:[%s6947_s13 + $0x18] sm:$0xff] }
 0x9b7   : > { %v6677_v36 = vsub.f32 %v2791_v61, %v2990_v3  ;;  %v6681_v21 = vsub.f32 %v2790_v15, %v2987_v30  ;;  %v5235_v4 = vpack.c.bf16 %v3024_v39, %v3023_v8  ;;  %v5259_v39 = vpack.c.bf16 %v3233_v13, %v3232_v24 }
 0x9b9   : > { %v3026_v60 = vmul.f32 %v6677_v36, %v6677_v36  ;;  %v3025_v33 = vmul.f32 %v6681_v21, %v6681_v21  ;;  %5236 = vmatprep.subr.bf16.mxu0 %v5235_v4 }
 0x9ba   : > { %5238 = vmatpush3.bf16.msra.mxu0 %v5235_v4  ;;  %v2996_v16 = vpop.xlane.xlu1 %2995  ;;  %v2993_v17 = vpop.xlane.xlu0 %2992 }
 0x9bb   : > { %v6689_v35 = vsub.f32 %v2793_v23, %v2996_v16  ;;  %v6693_v26 = vsub.f32 %v2792_v43, %v2993_v17  ;;  %v5239_v61 = vpack.c.bf16 %v3026_v60, %v3025_v33 }
 0x9bd   : > { %v3028_v15 = vmul.f32 %v6689_v35, %v6689_v35  ;;  %v3027_v55 = vmul.f32 %v6693_v26, %v6693_v26  ;;  %5240 = vmatprep.subr.bf16.mxu0 %v5239_v61 }
 0x9be   : > { %5242 = vmatpush3.bf16.msra.mxu0 %v5239_v61  ;;  %v3002_v18 = vpop.xlane.xlu1 %3001  ;;  %v2999_v29 = vpop.xlane.xlu0 %2998 }
 0x9bf   : > { %v6701_v0 = vsub.f32 %v2795_v28, %v3002_v18  ;;  %v6705_v1 = vsub.f32 %v2794_v47, %v2999_v29  ;;  %v5243_v23 = vpack.c.bf16 %v3028_v15, %v3027_v55 }
 0x9c1   : > { %v3030_v43 = vmul.f32 %v6701_v0, %v6701_v0  ;;  %v3029_v49 = vmul.f32 %v6705_v1, %v6705_v1  ;;  %5244 = vmatprep.subr.bf16.mxu0 %v5243_v23 }
 0x9c2   : > { %5246 = vmatpush3.bf16.msra.mxu0 %v5243_v23  ;;  %v3008_v58 = vpop.xlane.xlu1 %3007  ;;  %v3005_v25 = vpop.xlane.xlu0 %3004 }
 0x9c3   : > { %v6713_v41 = vsub.f32 %v2797_v6, %v3008_v58  ;;  %v6717_v31 = vsub.f32 %v2796_v9, %v3005_v25  ;;  %v5247_v28 = vpack.c.bf16 %v3030_v43, %v3029_v49 }
 0x9c5   : > { %v3032_v47 = vmul.f32 %v6713_v41, %v6713_v41  ;;  %v3031_v62 = vmul.f32 %v6717_v31, %v6717_v31  ;;  %5248 = vmatprep.subr.bf16.mxu0 %v5247_v28 }
 0x9c6   : > { %5250 = vmatpush3.bf16.msra.mxu0 %v5247_v28 }
 0x9c7   : > { %v5251_v12 = vpack.c.bf16 %v3032_v47, %v3031_v62 }
 0x9c9   : > { %5252 = vmatprep.subr.bf16.mxu0 %v5251_v12 }
 0x9ca   : > { %5254 = vmatpush3.bf16.msra.mxu0 %v5251_v12 }
 0x9cb   : > { %5256 = vmatprep.subr.bf16.mxu0 %v5255_v57 }
 0x9cd   : > { %4864 = vmatmul.mubr.msk.f32.vlgmr.msra.gmra.mrb[68].mxu0 %vm2810_vm2, %v6563_v53 }
 0x9ce   : > { %4866 = vmatprep.mubr.msk.f32.mxu0 %vm2810_vm2, %v6568_v59  ;;  %5258 = vmatpush3.bf16.msra.mxu0 %v5255_v57 }
 0x9cf   : > { %5260 = vmatprep.subr.bf16.mxu0 %v5259_v39 }
 0x9d1   : > { %4867 = vmatmul.mubr.msk.f32.gmra.mrb[70].mxu0 %vm2810_vm2, %v6577_v54 }
 0x9d2   : > { %4869 = vmatprep.mubr.msk.f32.mxu0 %vm2810_vm2, %v6582_v63  ;;  %5262 = vmatpush3.bf16.msra.mxu0 %v5259_v39 }
 0x9d5   : > { %4870 = vmatmul.mubr.msk.f32.gmra.mrb[72].mxu0 %vm2810_vm2, %v6591_v2 }
 0x9d6   : > { %4872 = vmatprep.mubr.msk.f32.mxu0 %vm2810_vm2, %v6596_v5 }
 0x9d9   : > { %4873 = vmatmul.mubr.msk.f32.gmra.mrb[74].mxu0 %vm2810_vm2, %v6605_v10 }
 0x9da   : > { %4875 = vmatprep.mubr.msk.f32.mxu0 %vm2810_vm2, %v6610_v11 }
 0x9dd   : > { %4876 = vmatmul.mubr.msk.f32.gmra.mrb[76].mxu0 %vm2810_vm2, %v6619_v14 }
 0x9de   : > { %4878 = vmatprep.mubr.msk.f32.mxu0 %vm2810_vm2, %v6624_v20 }
 0x9e1   : > { %4879 = vmatmul.mubr.msk.f32.gmra.mrb[78].mxu0 %vm2810_vm2, %v6633_v48 }
 0xaa0   : > { %v4865_v50 = vpop.f32.mrb[68].mxu0 }
 0xaa1   : > { %v3099_v44 = vpop.f32.mrb[69].mxu0  ;;  %v3161_v6 = vsel %vm2972_vm3, %v4865_v50, 0.0 }
 0xaa2   : > { %3162 = vadd.xlane.f32.xlu1 %v3161_v6  ;;  %v3158_v9 = vsel %vm2972_vm3, %v3099_v44, 0.0 }
 0xaa3   : > { %3159 = vadd.xlane.f32.xlu0 %v3158_v9 }
 0xaa4   : > { %v4868_v53 = vpop.f32.mrb[70].mxu0 }
 0xaa5   : > { %v3167_v59 = vsel %vm2972_vm3, %v4868_v53, 0.0  ;;  %v3109_v54 = vpop.f32.mrb[71].mxu0 }
 0xaa6   : > { %v3164_v63 = vsel %vm2972_vm3, %v3109_v54, 0.0  ;;  %3168 = vadd.xlane.f32.xlu1 %v3167_v59 }
 0xaa7   : > { %3165 = vadd.xlane.f32.xlu0 %v3164_v63 }
 0xaa8   : > { %v4871_v2 = vpop.f32.mrb[72].mxu0 }
 0xaa9   : > { %v3173_v5 = vsel %vm2972_vm3, %v4871_v2, 0.0  ;;  %v3119_v10 = vpop.f32.mrb[73].mxu0 }
 0xaaa   : > { %v3170_v11 = vsel %vm2972_vm3, %v3119_v10, 0.0  ;;  %3174 = vadd.xlane.f32.xlu1 %v3173_v5 }
 0xaab   : > { %3171 = vadd.xlane.f32.xlu0 %v3170_v11 }
 0xaac   : > { %v4874_v14 = vpop.f32.mrb[74].mxu0 }
 0xaad   : > { %v3179_v20 = vsel %vm2972_vm3, %v4874_v14, 0.0  ;;  %v3129_v48 = vpop.f32.mrb[75].mxu0 }
 0xaae   : > { %v3176_v32 = vsel %vm2972_vm3, %v3129_v48, 0.0  ;;  %3180 = vadd.xlane.f32.xlu1 %v3179_v20 }
 0xaaf   : > { %3177 = vadd.xlane.f32.xlu0 %v3176_v32 }
 0xab0   : > { %v4877_v34 = vpop.f32.mrb[76].mxu0 }
 0xab1   : > { %v3185_v38 = vsel %vm2972_vm3, %v4877_v34, 0.0  ;;  %v3139_v19 = vpop.f32.mrb[77].mxu0 }
 0xab2   : > { %v3182_v42 = vsel %vm2972_vm3, %v3139_v19, 0.0  ;;  %3186 = vadd.xlane.f32.xlu1 %v3185_v38 }
 0xab3   : > { %3183 = vadd.xlane.f32.xlu0 %v3182_v42 }
 0xab4   : > { %v4880_v45 = vpop.f32.mrb[78].mxu0 }
 0xab5   : > { %v3191_v46 = vsel %vm2972_vm3, %v4880_v45, 0.0  ;;  %v3149_v40 = vpop.f32.mrb[79].mxu0 }
 0xab6   : > { %v3188_v51 = vsel %vm2972_vm3, %v3149_v40, 0.0  ;;  %3192 = vadd.xlane.f32.xlu1 %v3191_v46 }
 0xab7   : > { %3189 = vadd.xlane.f32.xlu0 %v3188_v51 }
 0xb2f   : > { %v3163_v8 = vpop.xlane.xlu1 %3162 }
 0xb30   : > { %v3195_v3 = vadd.f32 1e-05, %v3163_v8  ;;  %v3160_v30 = vpop.xlane.xlu0 %3159 }
 0xb31   : > { %v3194_v4 = vadd.f32 1e-05, %v3160_v30 }
 0xb32   : > { %5534 = vrsqrt.f32 %v3195_v3 }
 0xb33   : > { %5536 = vrsqrt.f32 %v3194_v4  ;;  %v3169_v60 = vpop.xlane.xlu1 %3168 }
 0xb34   : > { %v3197_v33 = vadd.f32 1e-05, %v3169_v60  ;;  %v3166_v16 = vpop.xlane.xlu0 %3165  ;;  %v3569_v60 = vld [vmem:[%s6949_s15 + $0x8] sm:$0xff] }
 0xb35   : > { %v3196_v17 = vadd.f32 1e-05, %v3166_v16  ;;  %v3570_v16 = vld [vmem:[%s6949_s15 + $0x10] sm:$0xff] }
 0xb36   : > { %5538 = vrsqrt.f32 %v3197_v33  ;;  %v3396_v33 = vld [vmem:[%s6948_s14 + $0x8] sm:$0xff] }
 0xb37   : > { %5540 = vrsqrt.f32 %v3196_v17  ;;  %v3175_v61 = vpop.xlane.xlu1 %3174  ;;  %v3397_v17 = vld [vmem:[%s6948_s14 + $0x10] sm:$0xff] }
 0xb38   : > { %v3199_v15 = vadd.f32 1e-05, %v3175_v61  ;;  %v3172_v55 = vpop.xlane.xlu0 %3171  ;;  %v3571_v61 = vld [vmem:[%s6949_s15 + $0x18] sm:$0xff] }
 0xb39   : > { %v3198_v18 = vadd.f32 1e-05, %v3172_v55  ;;  %v3572_v55 = vld [vmem:[%s6949_s15 + $0x20] sm:$0xff] }
 0xb3a   : > { %5542 = vrsqrt.f32 %v3199_v15  ;;  %v3398_v15 = vld [vmem:[%s6948_s14 + $0x18] sm:$0xff] }
 0xb3b   : > { %5544 = vrsqrt.f32 %v3198_v18  ;;  %v3181_v29 = vpop.xlane.xlu1 %3180  ;;  %v3399_v18 = vld [vmem:[%s6948_s14 + $0x20] sm:$0xff] }
 0xb3c   : > { %v5535_v23 = vpop.eup %5534  ;;  %v3201_v43 = vadd.f32 1e-05, %v3181_v29  ;;  %v3178_v49 = vpop.xlane.xlu0 %3177  ;;  %v3573_v29 = vld [vmem:[%s6949_s15 + $0x28] sm:$0xff] }
 0xb3d   : > { %v5537_v58 = vpop.eup %5536  ;;  %v3200_v25 = vadd.f32 1e-05, %v3178_v49  ;;  %v3219_v47 = vmul.f32 %v5535_v23, %v6653_v37  ;;  %v3400_v23 = vld [vmem:[%s6948_s14 + $0x28] sm:$0xff]  ;;  %v3401_v49 = vld [vmem:[%s6948_s14 + $0x30] sm:$0xff] }
 0xb3e   : > { %5546 = vrsqrt.f32 %v3201_v43  ;;  %v3218_v28 = vmul.f32 %v5537_v58, %v6657_v7  ;;  %v3574_v43 = vld [vmem:[%s6949_s15 + $0x30] sm:$0xff]  ;;  %v3575_v58 = vld [vmem:[%s6949_s15 + $0x38] sm:$0xff] }
 0xb3f   : > { %5548 = vrsqrt.f32 %v3200_v25  ;;  %v3187_v62 = vpop.xlane.xlu1 %3186  ;;  %v3402_v25 = vld [vmem:[%s6948_s14 + $0x38] sm:$0xff] }
 0xb40   : > { %v5539_v12 = vpop.eup %5538  ;;  %v3203_v50 = vadd.f32 1e-05, %v3187_v62  ;;  %4889 = vmatprep.mubr.msk.f32.mxu0 %vm2972_vm3, %v3218_v28  ;;  %v3184_v44 = vpop.xlane.xlu0 %3183  ;;  %v3576_v28 = vld [vmem:[%s6949_s15 + $0x40] sm:$0xff]  ;;  %v3577_v62 = vld [vmem:[%s6949_s15 + $0x48] sm:$0xff] }
 0xb41   : > { %v5541_v6 = vpop.eup %5540  ;;  %v3202_v9 = vadd.f32 1e-05, %v3184_v44  ;;  %4890 = vmatmul.mubr.msk.f32.vlgmr.msra.gmra.mrb[80].mxu0 %vm2972_vm3, %v3219_v47  ;;  %v3221_v7 = vmul.f32 %v5539_v12, %v6665_v27  ;;  %v3403_v47 = vld [vmem:[%s6948_s14 + $0x40] sm:$0xff]  ;;  %v3404_v12 = vld [vmem:[%s6948_s14 + $0x48] sm:$0xff]  ;;  %v3405_v44 = vld [vmem:[%s6948_s14 + $0x50] sm:$0xff] }
 0xb42   : > { %5550 = vrsqrt.f32 %v3203_v50  ;;  %v3220_v53 = vmul.f32 %v5541_v6, %v6669_v52  ;;  %v3578_v50 = vld [vmem:[%s6949_s15 + $0x50] sm:$0xff]  ;;  %v3579_v6 = vld [vmem:[%s6949_s15 + $0x58] sm:$0xff] }
 0xb43   : > { %5552 = vrsqrt.f32 %v3202_v9  ;;  %v3193_v59 = vpop.xlane.xlu1 %3192  ;;  %v3406_v9 = vld [vmem:[%s6948_s14 + $0x58] sm:$0xff] }
 0xb44   : > { %v5543_v54 = vpop.eup %5542  ;;  %v3205_v37 = vadd.f32 1e-05, %v3193_v59  ;;  %4892 = vmatprep.mubr.msk.f32.mxu0 %vm2972_vm3, %v3220_v53  ;;  %v3190_v63 = vpop.xlane.xlu0 %3189 }
 0xb45   : > { %v5545_v2 = vpop.eup %5544  ;;  %v3204_v5 = vadd.f32 1e-05, %v3190_v63  ;;  %4893 = vmatmul.mubr.msk.f32.gmra.mrb[82].mxu0 %vm2972_vm3, %v3221_v7  ;;  %v3223_v11 = vmul.f32 %v5543_v54, %v6677_v36 }
 0xb46   : > { %5554 = vrsqrt.f32 %v3205_v37  ;;  %v3222_v10 = vmul.f32 %v5545_v2, %v6681_v21 }
 0xb47   : > { %5556 = vrsqrt.f32 %v3204_v5 }
 0xb48   : > { %v5547_v52 = vpop.eup %5546  ;;  %4895 = vmatprep.mubr.msk.f32.mxu0 %vm2972_vm3, %v3222_v10 }
 0xb49   : > { %v5549_v14 = vpop.eup %5548  ;;  %4896 = vmatmul.mubr.msk.f32.gmra.mrb[84].mxu0 %vm2972_vm3, %v3223_v11  ;;  %v3225_v20 = vmul.f32 %v5547_v52, %v6689_v35 }
 0xb4a   : > { %v3224_v27 = vmul.f32 %v5549_v14, %v6693_v26 }
 0xb4c   : > { %v5551_v48 = vpop.eup %5550  ;;  %4898 = vmatprep.mubr.msk.f32.mxu0 %vm2972_vm3, %v3224_v27 }
 0xb4d   : > { %v5553_v32 = vpop.eup %5552  ;;  %4899 = vmatmul.mubr.msk.f32.gmra.mrb[86].mxu0 %vm2972_vm3, %v3225_v20  ;;  %v3227_v36 = vmul.f32 %v5551_v48, %v6701_v0  ;;  %v3395_v0 = vld [vmem:[%s6948_s14] sm:$0xff] }
 0xb4e   : > { %v3226_v21 = vmul.f32 %v5553_v32, %v6705_v1  ;;  %v3568_v1 = vld [vmem:[%s6949_s15] sm:$0xff]  ;;  %4931 = vmatprep.mubr.msk.f32.mxu1 %vm2810_vm2, %v3395_v0 }
 0xb50   : > { %v5555_v34 = vpop.eup %5554  ;;  %4901 = vmatprep.mubr.msk.f32.mxu0 %vm2972_vm3, %v3226_v21 }
 0xb51   : > { %v5557_v38 = vpop.eup %5556  ;;  %4902 = vmatmul.mubr.msk.f32.gmra.mrb[88].mxu0 %vm2972_vm3, %v3227_v36  ;;  %v3229_v35 = vmul.f32 %v5555_v34, %v6713_v41 }
 0xb52   : > { %v3228_v26 = vmul.f32 %v5557_v38, %v6717_v31 }
 0xb54   : > { %4904 = vmatprep.mubr.msk.f32.mxu0 %vm2972_vm3, %v3228_v26 }
 0xb55   : > { %4905 = vmatmul.mubr.msk.f32.gmra.mrb[90].mxu0 %vm2972_vm3, %v3229_v35 }
 0xb56   : > { %4973 = vmatprep.mubr.msk.f32.mxu0 %vm2810_vm2, %v3568_v1 }
 0xc14   : > { %v4891_v19 = vpop.f32.mrb[80].mxu0 }
 0xc15   : > { %v3336_v31 = vpop.f32.mrb[81].mxu0 }
 0xc16   : > { %v5263_v42 = vpack.c.bf16 %v4891_v19, %v3336_v31 }
 0xc18   : > { %v4894_v41 = vpop.f32.mrb[82].mxu0  ;;  %5264 = vmatprep.subr.bf16.mxu1 %v5263_v42  ;;  %5288 = vmatprep.subr.bf16.mxu0 %v5263_v42 }
 0xc19   : > { %v3346_v45 = vpop.f32.mrb[83].mxu0  ;;  %5266 = vmatpush3.bf16.msra.mxu1 %v5263_v42  ;;  %5290 = vmatpush3.bf16.msra.mxu0 %v5263_v42 }
 0xc1a   : > { %v5267_v46 = vpack.c.bf16 %v4894_v41, %v3346_v45 }
 0xc1c   : > { %v4897_v40 = vpop.f32.mrb[84].mxu0  ;;  %5268 = vmatprep.subr.bf16.mxu1 %v5267_v46  ;;  %5292 = vmatprep.subr.bf16.mxu0 %v5267_v46 }
 0xc1d   : > { %v3356_v51 = vpop.f32.mrb[85].mxu0  ;;  %5270 = vmatpush3.bf16.msra.mxu1 %v5267_v46  ;;  %5294 = vmatpush3.bf16.msra.mxu0 %v5267_v46 }
 0xc1e   : > { %v5271_v56 = vpack.c.bf16 %v4897_v40, %v3356_v51 }
 0xc20   : > { %v4900_v22 = vpop.f32.mrb[86].mxu0  ;;  %5272 = vmatprep.subr.bf16.mxu1 %v5271_v56  ;;  %5296 = vmatprep.subr.bf16.mxu0 %v5271_v56 }
 0xc21   : > { %v3366_v57 = vpop.f32.mrb[87].mxu0  ;;  %5274 = vmatpush3.bf16.msra.mxu1 %v5271_v56  ;;  %5298 = vmatpush3.bf16.msra.mxu0 %v5271_v56 }
 0xc22   : > { %v5275_v24 = vpack.c.bf16 %v4900_v22, %v3366_v57 }
 0xc24   : > { %v4903_v13 = vpop.f32.mrb[88].mxu0  ;;  %5276 = vmatprep.subr.bf16.mxu1 %v5275_v24  ;;  %5300 = vmatprep.subr.bf16.mxu0 %v5275_v24 }
 0xc25   : > { %v3376_v39 = vpop.f32.mrb[89].mxu0  ;;  %5278 = vmatpush3.bf16.msra.mxu1 %v5275_v24  ;;  %5302 = vmatpush3.bf16.msra.mxu0 %v5275_v24 }
 0xc26   : > { %v5279_v8 = vpack.c.bf16 %v4903_v13, %v3376_v39 }
 0xc28   : > { %v4906_v3 = vpop.f32.mrb[90].mxu0  ;;  %5280 = vmatprep.subr.bf16.mxu1 %v5279_v8  ;;  %5304 = vmatprep.subr.bf16.mxu0 %v5279_v8 }
 0xc29   : > { %v3386_v30 = vpop.f32.mrb[91].mxu0  ;;  %5282 = vmatpush3.bf16.msra.mxu1 %v5279_v8  ;;  %5306 = vmatpush3.bf16.msra.mxu0 %v5279_v8 }
 0xc2a   : > { %v5283_v4 = vpack.c.bf16 %v4906_v3, %v3386_v30 }
 0xc2c   : > { %5284 = vmatprep.subr.bf16.mxu1 %v5283_v4  ;;  %5308 = vmatprep.subr.bf16.mxu0 %v5283_v4 }
 0xc2d   : > { %5286 = vmatpush3.bf16.msra.mxu1 %v5283_v4  ;;  %5310 = vmatpush3.bf16.msra.mxu0 %v5283_v4 }
 0xc30   : > { %4974 = vmatmul.mubr.msk.f32.vlgmr.msra.gmra.mrb[92].mxu0 %vm2810_vm2, %v3569_v60  ;;  %4932 = vmatmul.mubr.msk.f32.vlgmr.msra.gmra.mrb[28].mxu1 %vm2810_vm2, %v3396_v33 }
 0xc31   : > { %4976 = vmatprep.mubr.msk.f32.mxu0 %vm2810_vm2, %v3570_v16  ;;  %4934 = vmatprep.mubr.msk.f32.mxu1 %vm2810_vm2, %v3397_v17 }
 0xc34   : > { %4977 = vmatmul.mubr.msk.f32.gmra.mrb[94].mxu0 %vm2810_vm2, %v3571_v61  ;;  %4935 = vmatmul.mubr.msk.f32.gmra.mrb[30].mxu1 %vm2810_vm2, %v3398_v15 }
 0xc35   : > { %4979 = vmatprep.mubr.msk.f32.mxu0 %vm2810_vm2, %v3572_v55  ;;  %4937 = vmatprep.mubr.msk.f32.mxu1 %vm2810_vm2, %v3399_v18 }
 0xc38   : > { %4980 = vmatmul.mubr.msk.f32.gmra.mrb[96].mxu0 %vm2810_vm2, %v3573_v29  ;;  %4938 = vmatmul.mubr.msk.f32.gmra.mrb[32].mxu1 %vm2810_vm2, %v3400_v23 }
 0xc39   : > { %4982 = vmatprep.mubr.msk.f32.mxu0 %vm2810_vm2, %v3574_v43  ;;  %4940 = vmatprep.mubr.msk.f32.mxu1 %vm2810_vm2, %v3401_v49 }
 0xc3c   : > { %4983 = vmatmul.mubr.msk.f32.gmra.mrb[98].mxu0 %vm2810_vm2, %v3575_v58  ;;  %4941 = vmatmul.mubr.msk.f32.gmra.mrb[34].mxu1 %vm2810_vm2, %v3402_v25 }
 0xc3d   : > { %4985 = vmatprep.mubr.msk.f32.mxu0 %vm2810_vm2, %v3576_v28  ;;  %4943 = vmatprep.mubr.msk.f32.mxu1 %vm2810_vm2, %v3403_v47 }
 0xc40   : > { %4986 = vmatmul.mubr.msk.f32.gmra.mrb[100].mxu0 %vm2810_vm2, %v3577_v62  ;;  %4944 = vmatmul.mubr.msk.f32.gmra.mrb[36].mxu1 %vm2810_vm2, %v3404_v12 }
 0xc41   : > { %4988 = vmatprep.mubr.msk.f32.mxu0 %vm2810_vm2, %v3578_v50  ;;  %4946 = vmatprep.mubr.msk.f32.mxu1 %vm2810_vm2, %v3405_v44 }
 0xc44   : > { %4989 = vmatmul.mubr.msk.f32.gmra.mrb[102].mxu0 %vm2810_vm2, %v3579_v6  ;;  %4947 = vmatmul.mubr.msk.f32.gmra.mrb[38].mxu1 %vm2810_vm2, %v3406_v9 }
 0xd03   : > { %v4975_v53 = vpop.f32.mrb[92].mxu0  ;;  %v4933_v59 = vpop.f32.mrb[28].mxu1 }
 0xd04   : > { %v3682_v7 = vpop.f32.mrb[93].mxu0  ;;  %3755 = vrot.lane.b32.xlu1 %v4975_v53, %s5569_s0  ;;  %v3509_v54 = vpop.f32.mrb[29].mxu1 }
 0xd05   : > { %3753 = vrot.lane.b32.xlu0 %v3682_v7, %s5569_s0 }
 0xd07   : > { %v4978_v37 = vpop.f32.mrb[94].mxu0  ;;  %v4936_v63 = vpop.f32.mrb[30].mxu1 }
 0xd08   : > { %v3692_v2 = vpop.f32.mrb[95].mxu0  ;;  %v3519_v5 = vpop.f32.mrb[31].mxu1 }
 0xd09   : > { %3759 = vrot.lane.b32.xlu0 %v4978_v37, %s5569_s0  ;;  %3757 = vrot.lane.b32.xlu1 %v3692_v2, %s5569_s0 }
 0xd0b   : > { %v4981_v10 = vpop.f32.mrb[96].mxu0  ;;  %v4939_v11 = vpop.f32.mrb[32].mxu1 }
 0xd0c   : > { %v3702_v52 = vpop.f32.mrb[97].mxu0  ;;  %v3529_v14 = vpop.f32.mrb[33].mxu1 }
 0xd0d   : > { %3763 = vrot.lane.b32.xlu0 %v4981_v10, %s5569_s0  ;;  %3761 = vrot.lane.b32.xlu1 %v3702_v52, %s5569_s0 }
 0xd0f   : > { %v4984_v27 = vpop.f32.mrb[98].mxu0  ;;  %v4942_v20 = vpop.f32.mrb[34].mxu1 }
 0xd10   : > { %v3712_v48 = vpop.f32.mrb[99].mxu0  ;;  %v3539_v32 = vpop.f32.mrb[35].mxu1 }
 0xd11   : > { %3767 = vrot.lane.b32.xlu0 %v4984_v27, %s5569_s0  ;;  %3765 = vrot.lane.b32.xlu1 %v3712_v48, %s5569_s0 }
 0xd13   : > { %v4987_v21 = vpop.f32.mrb[100].mxu0  ;;  %v4945_v36 = vpop.f32.mrb[36].mxu1 }
 0xd14   : > { %v3722_v34 = vpop.f32.mrb[101].mxu0  ;;  %v3549_v38 = vpop.f32.mrb[37].mxu1 }
 0xd15   : > { %3771 = vrot.lane.b32.xlu0 %v4987_v21, %s5569_s0  ;;  %3769 = vrot.lane.b32.xlu1 %v3722_v34, %s5569_s0 }
 0xd17   : > { %v4990_v26 = vpop.f32.mrb[102].mxu0  ;;  %v4948_v35 = vpop.f32.mrb[38].mxu1 }
 0xd18   : > { %v3732_v1 = vpop.f32.mrb[103].mxu0  ;;  %v3559_v0 = vpop.f32.mrb[39].mxu1 }
 0xd19   : > { %3775 = vrot.lane.b32.xlu0 %v4990_v26, %s5569_s0  ;;  %3773 = vrot.lane.b32.xlu1 %v3732_v1, %s5569_s0 }
 0xd76   : > { %v3756_v19 = vpop.permute.xlu1 %3755 }
 0xd77   : > { %v3790_v31 = vsel %vm726_vm1, %v4933_v59, %v3756_v19  ;;  %v3754_v42 = vpop.permute.xlu0 %3753 }
 0xd78   : > { %3802 = vst [vmem:[%s6905_s28 + $0x8] sm:$0xff] %v3790_v31  ;;  %v3789_v41 = vsel %vm726_vm1, %v3509_v54, %v3754_v42 }
 0xd79   : > { %3801 = vst [vmem:[%s6905_s28] sm:$0xff] %v3789_v41 }
 0xd7b   : > { %v3760_v45 = vpop.permute.xlu0 %3759  ;;  %v3758_v46 = vpop.permute.xlu1 %3757 }
 0xd7c   : > { %v3792_v40 = vsel %vm726_vm1, %v4936_v63, %v3760_v45  ;;  %v3791_v51 = vsel %vm726_vm1, %v3519_v5, %v3758_v46 }
 0xd7d   : > { %3804 = vst [vmem:[%s6905_s28 + $0x18] sm:$0xff] %v3792_v40  ;;  %3803 = vst [vmem:[%s6905_s28 + $0x10] sm:$0xff] %v3791_v51 }
 0xd7f   : > { %v3764_v56 = vpop.permute.xlu0 %3763  ;;  %v3762_v22 = vpop.permute.xlu1 %3761 }
 0xd80   : > { %v3794_v57 = vsel %vm726_vm1, %v4939_v11, %v3764_v56  ;;  %v3793_v24 = vsel %vm726_vm1, %v3529_v14, %v3762_v22 }
 0xd81   : > { %3806 = vst [vmem:[%s6905_s28 + $0x28] sm:$0xff] %v3794_v57  ;;  %3805 = vst [vmem:[%s6905_s28 + $0x20] sm:$0xff] %v3793_v24 }
 0xd83   : > { %v3768_v13 = vpop.permute.xlu0 %3767  ;;  %v3766_v39 = vpop.permute.xlu1 %3765 }
 0xd84   : > { %v3796_v8 = vsel %vm726_vm1, %v4942_v20, %v3768_v13  ;;  %v3795_v3 = vsel %vm726_vm1, %v3539_v32, %v3766_v39 }
 0xd85   : > { %3808 = vst [vmem:[%s6905_s28 + $0x38] sm:$0xff] %v3796_v8  ;;  %3807 = vst [vmem:[%s6905_s28 + $0x30] sm:$0xff] %v3795_v3 }
 0xd87   : > { %v3772_v30 = vpop.permute.xlu0 %3771  ;;  %v3770_v4 = vpop.permute.xlu1 %3769 }
 0xd88   : > { %v3798_v60 = vsel %vm726_vm1, %v4945_v36, %v3772_v30  ;;  %v3797_v33 = vsel %vm726_vm1, %v3549_v38, %v3770_v4 }
 0xd89   : > { %3810 = vst [vmem:[%s6905_s28 + $0x48] sm:$0xff] %v3798_v60  ;;  %3809 = vst [vmem:[%s6905_s28 + $0x40] sm:$0xff] %v3797_v33 }
 0xd8b   : > { %v3776_v16 = vpop.permute.xlu0 %3775  ;;  %v3774_v17 = vpop.permute.xlu1 %3773 }
 0xd8c   : > { %v3800_v61 = vsel %vm726_vm1, %v4948_v35, %v3776_v16  ;;  %v3799_v15 = vsel %vm726_vm1, %v3559_v0, %v3774_v17 }
 0xd8d   : > { %3812 = vst [vmem:[%s6905_s28 + $0x58] sm:$0xff] %v3800_v61  ;;  %3811 = vst [vmem:[%s6905_s28 + $0x50] sm:$0xff] %v3799_v15 }
 0xd8e PF: > { %s26_s21 = sadd.s32 1, %s5564_s21  }
 0xd8f   : > { %p23_p4 = scmp.ge.s32.totalorder %s26_s21, 4  }
 0xd91   :  { %25 = sbr.rel (!%p23_p4) target bundleno = 2 (0x2), region = 114 }

</bundles_post_ra>
